<compile_context>
chip_gen: v5e
topology: v5e:2x2
jax: 0.10.0
libtpu: 0.0.40
codegen_flags: <defaults>
</compile_context>

<pallas_src>
import jax
import jax.numpy as jnp
from jax.experimental import pallas as pl
from jax.experimental.pallas import tpu as pltpu

N_INPUT_DIMS = 3
N_OUTPUT_DIMS = 3
N_NEURONS = 64          # from config['network']['n_neurons']
N_HIDDEN_LAYERS = 2     # from config['network']['n_hidden_layers']
PAD_D = 8               # feature dims padded to sublane granularity
TILE_N = 2048           # points per grid step (lane axis) — sweep 2048..8192


def _mlp_kernel(x_ref, w1t_ref, w2t_ref, w3t_ref, o_ref):
    """One lane-dense tile of points through the full MLP (3 -> 64 -> 64 -> 3).

    Feature-major layout (points on the lane axis):
      x_ref  : (PAD_D, TILE_N)       bf16, rows 0..2 = xyz, rows 3..7 = 0
      w1t_ref: (N_NEURONS, PAD_D)    bf16, = pad(w_in, K 3->8).T
      w2t_ref: (N_NEURONS, N_NEURONS)bf16, = w_hid.T
      w3t_ref: (PAD_D, N_NEURONS)    bf16, = pad(w_out, out 3->8).T
      o_ref  : (PAD_D, TILE_N)       f32,  rows 0..2 valid, rows 3..7 = 0
    """
    x = x_ref[...]
    # input layer + ReLU  (K=8 contraction, zero-padded from 3)
    h = jnp.dot(w1t_ref[...], x, preferred_element_type=jnp.float32)
    h = jnp.maximum(h, 0.0).astype(jnp.bfloat16)
    # hidden layer + ReLU  (n_hidden_layers=2 -> one 64x64 hidden matmul)
    h = jnp.dot(w2t_ref[...], h, preferred_element_type=jnp.float32)
    h = jnp.maximum(h, 0.0).astype(jnp.bfloat16)
    # output layer, linear (output_activation = "None"), f32 out (lane-dense store)
    o_ref[...] = jnp.dot(w3t_ref[...], h, preferred_element_type=jnp.float32)


def global_t_field_forward(pcd, w_in, w_hid, w_out, *, tile_n=TILE_N):
    """pcd: (N, 3) float32 -> global_translation: (N, 3) float32."""
    n, d = pcd.shape
    assert d == N_INPUT_DIMS
    n_pad = pl.cdiv(n, tile_n) * tile_n

    # Wrapper-side layout plumbing: feature-major (D, N) lane-dense slabs,
    # zero-padded feature dim (3 -> 8) and ragged batch tail, bf16 operands.
    x = jnp.zeros((PAD_D, n_pad), jnp.bfloat16)
    x = x.at[:N_INPUT_DIMS, :n].set(pcd.T.astype(jnp.bfloat16))

    w1t = jnp.zeros((N_NEURONS, PAD_D), jnp.bfloat16)
    w1t = w1t.at[:, :N_INPUT_DIMS].set(w_in.T.astype(jnp.bfloat16))
    w2t = w_hid.T.astype(jnp.bfloat16)
    w3t = jnp.zeros((PAD_D, N_NEURONS), jnp.bfloat16)
    w3t = w3t.at[:N_OUTPUT_DIMS, :].set(w_out.T.astype(jnp.bfloat16))

    grid = (n_pad // tile_n,)
    out = pl.pallas_call(
        _mlp_kernel,
        out_shape=jax.ShapeDtypeStruct((PAD_D, n_pad), jnp.float32),
        grid_spec=pltpu.PrefetchScalarGridSpec(
            num_scalar_prefetch=0,
            grid=grid,
            in_specs=[
                # points: tiled along the lane (batch) axis
                pl.BlockSpec((PAD_D, tile_n), lambda i: (0, i)),
                # weights: tiny, constant block index -> resident across the grid
                pl.BlockSpec((N_NEURONS, PAD_D), lambda i: (0, 0)),
                pl.BlockSpec((N_NEURONS, N_NEURONS), lambda i: (0, 0)),
                pl.BlockSpec((PAD_D, N_NEURONS), lambda i: (0, 0)),
            ],
            out_specs=pl.BlockSpec((PAD_D, tile_n), lambda i: (0, i)),
        ),
        compiler_params=pltpu.CompilerParams(
            dimension_semantics=("parallel",)),
    )(x, w1t, w2t, w3t)

    # Drop the padded feature rows / batch tail, return (N, 3) float32.
    return out[:N_OUTPUT_DIMS, :n].T


def init_params(key):
    """Deterministic synthetic weights (tcnn FullyFusedMLP has no biases)."""
    k1, k2, k3 = jax.random.split(key, 3)
    scale_in = 1.0 / jnp.sqrt(jnp.float32(N_INPUT_DIMS))
    scale_h = 1.0 / jnp.sqrt(jnp.float32(N_NEURONS))
    w_in = jax.random.uniform(k1, (N_INPUT_DIMS, N_NEURONS),
                              jnp.float32, -scale_in, scale_in)
    w_hid = jax.random.uniform(k2, (N_NEURONS, N_NEURONS),
                               jnp.float32, -scale_h, scale_h)
    w_out = jax.random.uniform(k3, (N_NEURONS, N_OUTPUT_DIMS),
                               jnp.float32, -scale_h, scale_h)
    return w_in, w_hid, w_out


def reference_forward(pcd, w_in, w_hid, w_out):
    """bf16-matched reference (same precision path as the kernel)."""
    x = pcd.astype(jnp.bfloat16)
    h = jnp.dot(x, w_in.astype(jnp.bfloat16),
                preferred_element_type=jnp.float32)
    h = jnp.maximum(h, 0.0).astype(jnp.bfloat16)
    h = jnp.dot(h, w_hid.astype(jnp.bfloat16),
                preferred_element_type=jnp.float32)
    h = jnp.maximum(h, 0.0).astype(jnp.bfloat16)
    return jnp.dot(h, w_out.astype(jnp.bfloat16),
                   preferred_element_type=jnp.float32)


if __name__ == "__main__":
    key = jax.random.PRNGKey(0)
    k_pcd, k_params = jax.random.split(key)

    # Small point cloud (also exercises the ragged-tail padding path).
    n_points = 5000
    pcd = jax.random.uniform(k_pcd, (n_points, 3), jnp.float32, -1.0, 1.0)
    w_in, w_hid, w_out = init_params(k_params)

    fwd = jax.jit(global_t_field_forward)
    out = fwd(pcd, w_in, w_hid, w_out)
    out = jax.block_until_ready(out)

    ref = reference_forward(pcd, w_in, w_hid, w_out)
    assert out.shape == (n_points, 3) and out.dtype == jnp.float32
    assert jnp.allclose(out, ref, atol=1e-4, rtol=1e-3)

    print("KERNEL_OK")
</pallas_src>

<mosaic_0001>
module attributes {stable_mosaic.version = 11 : i64} {
  func.func @_mlp_kernel(%arg0: i32, %arg1: memref<8x2048xbf16, #tpu.memory_space<vmem>>, %arg2: memref<64x8xbf16, #tpu.memory_space<vmem>>, %arg3: memref<64x64xbf16, #tpu.memory_space<vmem>>, %arg4: memref<8x64xbf16, #tpu.memory_space<vmem>>, %arg5: memref<8x2048xf32, #tpu.memory_space<vmem>>) attributes {dimension_semantics = [#tpu.dimension_semantics<parallel>], iteration_bounds = array<i64: 3>, scalar_prefetch = 0 : i64, scratch_operands = 0 : i64, tpu.core_type = #tpu.core_type<tc>, window_params = [{transform_indices = @transform_0, window_bounds = array<i64: 8, 2048>}, {pipeline_mode = #tpu.pipeline_mode<synchronous>, transform_indices = @transform_1, window_bounds = array<i64: 64, 8>}, {pipeline_mode = #tpu.pipeline_mode<synchronous>, transform_indices = @transform_2, window_bounds = array<i64: 64, 64>}, {pipeline_mode = #tpu.pipeline_mode<synchronous>, transform_indices = @transform_3, window_bounds = array<i64: 8, 64>}, {transform_indices = @transform_4, window_bounds = array<i64: 8, 2048>}]} {
    %c0 = arith.constant 0 : index
    %c0_0 = arith.constant 0 : index
    %0 = vector.load %arg1[%c0, %c0_0] : memref<8x2048xbf16, #tpu.memory_space<vmem>>, vector<8x2048xbf16>
    %c0_1 = arith.constant 0 : index
    %c0_2 = arith.constant 0 : index
    %1 = vector.load %arg2[%c0_1, %c0_2] : memref<64x8xbf16, #tpu.memory_space<vmem>>, vector<64x8xbf16>
    %cst = arith.constant dense<0.000000e+00> : vector<64x2048xf32>
    %2 = tpu.matmul %1, %0, %cst {dimension_numbers = #tpu.dot_dimension_numbers<[1], [0], [0], [1], [0, 0, 1, 1], [], []>} : vector<64x8xbf16>, vector<8x2048xbf16>, vector<64x2048xf32> -> vector<64x2048xf32>
    %cst_3 = arith.constant 0.000000e+00 : f32
    %3 = vector.broadcast %cst_3 : f32 to vector<64x2048xf32>
    %4 = arith.maximumf %2, %3 : vector<64x2048xf32>
    %5 = arith.truncf %4 : vector<64x2048xf32> to vector<64x2048xbf16>
    %c0_4 = arith.constant 0 : index
    %c0_5 = arith.constant 0 : index
    %6 = vector.load %arg3[%c0_4, %c0_5] : memref<64x64xbf16, #tpu.memory_space<vmem>>, vector<64x64xbf16>
    %cst_6 = arith.constant dense<0.000000e+00> : vector<64x2048xf32>
    %7 = tpu.matmul %6, %5, %cst_6 {dimension_numbers = #tpu.dot_dimension_numbers<[1], [0], [0], [1], [0, 0, 1, 1], [], []>} : vector<64x64xbf16>, vector<64x2048xbf16>, vector<64x2048xf32> -> vector<64x2048xf32>
    %cst_7 = arith.constant 0.000000e+00 : f32
    %8 = vector.broadcast %cst_7 : f32 to vector<64x2048xf32>
    %9 = arith.maximumf %7, %8 : vector<64x2048xf32>
    %10 = arith.truncf %9 : vector<64x2048xf32> to vector<64x2048xbf16>
    %c0_8 = arith.constant 0 : index
    %c0_9 = arith.constant 0 : index
    %11 = vector.load %arg4[%c0_8, %c0_9] : memref<8x64xbf16, #tpu.memory_space<vmem>>, vector<8x64xbf16>
    %cst_10 = arith.constant dense<0.000000e+00> : vector<8x2048xf32>
    %12 = tpu.matmul %11, %10, %cst_10 {dimension_numbers = #tpu.dot_dimension_numbers<[1], [0], [0], [1], [0, 0, 1, 1], [], []>} : vector<8x64xbf16>, vector<64x2048xbf16>, vector<8x2048xf32> -> vector<8x2048xf32>
    %c0_11 = arith.constant 0 : index
    %c0_12 = arith.constant 0 : index
    %13 = vector.load %arg5[%c0_11, %c0_12] : memref<8x2048xf32, #tpu.memory_space<vmem>>, vector<8x2048xf32>
    tpu.vector_store %arg5[%c0_11, %c0_12], %12 {strides = array<i32>} : memref<8x2048xf32, #tpu.memory_space<vmem>>, vector<8x2048xf32>,
    return
  }
  func.func @transform_0(%arg0: i32) -> (i32, i32) {
    %c0_i32 = arith.constant 0 : i32
    %c0_i32_0 = arith.constant 0 : i32
    return %c0_i32, %arg0 : i32, i32
  }
  func.func @transform_1(%arg0: i32) -> (i32, i32) {
    %c0_i32 = arith.constant 0 : i32
    %c0_i32_0 = arith.constant 0 : i32
    %c0_i32_1 = arith.constant 0 : i32
    return %c0_i32, %c0_i32_0 : i32, i32
  }
  func.func @transform_2(%arg0: i32) -> (i32, i32) {
    %c0_i32 = arith.constant 0 : i32
    %c0_i32_0 = arith.constant 0 : i32
    %c0_i32_1 = arith.constant 0 : i32
    return %c0_i32, %c0_i32_0 : i32, i32
  }
  func.func @transform_3(%arg0: i32) -> (i32, i32) {
    %c0_i32 = arith.constant 0 : i32
    %c0_i32_0 = arith.constant 0 : i32
    %c0_i32_1 = arith.constant 0 : i32
    return %c0_i32, %c0_i32_0 : i32, i32
  }
  func.func @transform_4(%arg0: i32) -> (i32, i32) {
    %c0_i32 = arith.constant 0 : i32
    %c0_i32_0 = arith.constant 0 : i32
    return %c0_i32, %arg0 : i32, i32
  }
}

</mosaic_0001>

<bundles_post_ra>
// kernel: global_t_field_forward.1
= control target key start
LH: loop header
LB: loop body
LE: loop exit
PB: predicated region body
PF: predicated region fallthrough
CT: control target
= control target key end

     0   :  { %s2213_s15 = smov 0   ;;  %s3055_s0 = inlined_call_operand.vmem [shape: bf16[8,6144], index: 0, kind: input, shape index: {}]   ;;  %s3056_s1 = inlined_call_operand.vmem [shape: bf16[64,8], index: 1, kind: input, shape index: {}]   ;;  %s3057_s2 = inlined_call_operand.vmem [shape: bf16[64,64], index: 2, kind: input, shape index: {}]   ;;  %s3058_s3 = inlined_call_operand.vmem [shape: bf16[8,64], index: 3, kind: input, shape index: {}]   ;;  %s3059_s4 = inlined_call_operand.vmem [shape: f32[8,6144], index: 4, kind: output, shape index: {}]  }
   0x1 LB: > { %s1977_s16 = sadd.s32 4294967295, %s2186_s15   ;;  %p1981_p0 = scmp.ge.s32.totalorder %s2186_s15, 1  ;;  %s2186_s15 = sphi %s2213_s15, %s14_s15  }
   0x2   : > { %p163_p1 = scmp.lt.s32.totalorder %s2186_s15, 4 }
   0x4   : > { %p164_p2 = pnand %p1981_p0, %p163_p1 }
   0x5   : > { %s1982_s17 = sshll.u32 (!%p164_p2), %s1977_s16, 4 }
   0x6   : > { %167 = sbr.rel (%p164_p2) target bundleno = 819 (0x333), region = 36  ;;  %p190_p3 = scmp.lt.s32.totalorder (!%p164_p2), %s1982_s17, 47 }
   0xb   : > { %s3061_s17 = smov (!%p190_p3, %s1982_s17), 47  ;;  %vm291_vm0 = vcmask 1043456   ;;  %v2240_v24 = vld [vmem:[%s3056_s1] sm:$0xff]  ;;  %vm278_vm1 = vcmask 64512   ;;  %v2257_v29 = vld [vmem:[%s3056_s1 + $0x8] sm:$0xff]  ;;  %v2270_v30 = vld [vmem:[%s3056_s1 + $0x10] sm:$0xff] }
   0xc   : > { %s1983_s18 = sshll.u32 %s3061_s17, 2  ;;  %v2289_v45 = vld [vmem:[%s3056_s1 + $0x18] sm:$0xff]  ;;  %vm1024_vm2 = vcmask 523264   ;;  %s1985_s14 = sshll.u32 %s3061_s17, 3 }
   0xd   : > { %s2227_s21 = scalar_lea.vmem %s3055_s0, %s1983_s18  ;;  %s3034_s19 = scalar_lea.vmem %s3059_s4, %s1985_s14 }
   0xe   : > { %v202_v0 = vld [vmem:[%s2227_s21] sm:$0xff]  ;;  %v203_v1 = vld [vmem:[%s2227_s21 + $0x8] sm:$0xff]  ;;  %v205_v2 = vld [vmem:[%s2227_s21 + $0x18] sm:$0xff] }
   0xf   : > { %v246_v3 = vunpack.c.l.b16 %v202_v0  ;;  %v247_v4 = vunpack.c.h.b16 %v202_v0  ;;  %v248_v5 = vunpack.c.l.b16 %v203_v1  ;;  %v249_v6 = vunpack.c.h.b16 %v203_v1  ;;  %v204_v7 = vld [vmem:[%s2227_s21 + $0x10] sm:$0xff]  ;;  %v207_v31 = vld [vmem:[%s2227_s21 + $0x28] sm:$0xff]  ;;  %v206_v32 = vld [vmem:[%s2227_s21 + $0x20] sm:$0xff] }
  0x10   : > { %v252_v8 = vunpack.c.l.b16 %v205_v2  ;;  %v253_v9 = vunpack.c.h.b16 %v205_v2  ;;  %v250_v10 = vunpack.c.l.b16 %v204_v7  ;;  %v251_v11 = vunpack.c.h.b16 %v204_v7  ;;  %v209_v46 = vld [vmem:[%s2227_s21 + $0x38] sm:$0xff]  ;;  %v208_v53 = vld [vmem:[%s2227_s21 + $0x30] sm:$0xff] }
  0x11   : > { %v262_v12 = vpack.c.b16 %v246_v3, %v246_v3  ;;  %v263_v13 = vpack.c.b16 %v247_v4, %v247_v4  ;;  %v264_v14 = vpack.c.b16 %v248_v5, %v248_v5  ;;  %v265_v15 = vpack.c.b16 %v249_v6, %v249_v6 }
  0x12   : > { %v268_v16 = vpack.c.b16 %v252_v8, %v252_v8  ;;  %v269_v17 = vpack.c.b16 %v253_v9, %v253_v9  ;;  %v266_v18 = vpack.c.b16 %v250_v10, %v250_v10  ;;  %v267_v19 = vpack.c.b16 %v251_v11, %v251_v11 }
  0x13   : > { %v293_v20 = vsel %vm291_vm0, %v262_v12, 0  ;;  %v296_v21 = vsel %vm291_vm0, %v263_v13, 0  ;;  %v299_v22 = vsel %vm291_vm0, %v264_v14, 0  ;;  %v302_v23 = vsel %vm291_vm0, %v265_v15, 0 }
  0x14   : > { %347 = vmatpush.bf16.msra.mxu0 %v293_v20  ;;  %376 = vmatpush.bf16.msra.mxu1 %v296_v21  ;;  %v311_v25 = vsel %vm291_vm0, %v268_v16, 0  ;;  %v314_v26 = vsel %vm291_vm0, %v269_v17, 0  ;;  %v305_v27 = vsel %vm291_vm0, %v266_v18, 0  ;;  %v308_v28 = vsel %vm291_vm0, %v267_v19, 0 }
  0x15   : > { %405 = vmatpush.bf16.msra.mxu2 %v299_v22  ;;  %434 = vmatpush.bf16.msra.mxu3 %v302_v23  ;;  %v256_v33 = vunpack.c.l.b16 %v207_v31  ;;  %v257_v34 = vunpack.c.h.b16 %v207_v31  ;;  %v254_v35 = vunpack.c.l.b16 %v206_v32  ;;  %v255_v36 = vunpack.c.h.b16 %v206_v32 }
  0x16   : > { %v260_v47 = vunpack.c.l.b16 %v209_v46  ;;  %v261_v48 = vunpack.c.h.b16 %v209_v46  ;;  %v258_v54 = vunpack.c.l.b16 %v208_v53  ;;  %v259_v55 = vunpack.c.h.b16 %v208_v53 }
  0x17   : > { %2002 = vmatmul.msk.bf16.vlgmr.msra.gmra.mxu0 %vm278_vm1, %v2240_v24  ;;  %2006 = vmatmul.msk.bf16.vlgmr.msra.gmra.mxu1 %vm278_vm1, %v2240_v24  ;;  %v272_v37 = vpack.c.b16 %v256_v33, %v256_v33  ;;  %v273_v38 = vpack.c.b16 %v257_v34, %v257_v34  ;;  %v270_v39 = vpack.c.b16 %v254_v35, %v254_v35 }
  0x18   : > { %2010 = vmatmul.msk.bf16.vlgmr.msra.gmra.mxu2 %vm278_vm1, %v2240_v24  ;;  %2014 = vmatmul.msk.bf16.vlgmr.msra.gmra.mxu3 %vm278_vm1, %v2240_v24  ;;  %v271_v40 = vpack.c.b16 %v255_v36, %v255_v36  ;;  %v276_v49 = vpack.c.b16 %v260_v47, %v260_v47  ;;  %v277_v50 = vpack.c.b16 %v261_v48, %v261_v48 }
  0x19   : > { %521 = vmatpush.bf16.msrb.mxu2 %v311_v25  ;;  %550 = vmatpush.bf16.msrb.mxu3 %v314_v26  ;;  %v323_v41 = vsel %vm291_vm0, %v272_v37, 0  ;;  %v326_v42 = vsel %vm291_vm0, %v273_v38, 0  ;;  %v317_v43 = vsel %vm291_vm0, %v270_v39, 0  ;;  %v274_v56 = vpack.c.b16 %v258_v54, %v258_v54 }
  0x1a   : > { %463 = vmatpush.bf16.msrb.mxu0 %v305_v27  ;;  %492 = vmatpush.bf16.msrb.mxu1 %v308_v28  ;;  %v320_v44 = vsel %vm291_vm0, %v271_v40, 0  ;;  %v335_v51 = vsel %vm291_vm0, %v276_v49, 0  ;;  %v338_v52 = vsel %vm291_vm0, %v277_v50, 0  ;;  %v275_v57 = vpack.c.b16 %v259_v55, %v259_v55 }
  0x1b   : > { %v329_v58 = vsel %vm291_vm0, %v274_v56, 0 }
  0x1c   : > { %v332_v59 = vsel %vm291_vm0, %v275_v57, 0 }
  0x1d   : > { %637 = vmatpush.bf16.msra.mxu2 %v323_v41  ;;  %666 = vmatpush.bf16.msra.mxu3 %v326_v42 }
  0x1e   : > { %579 = vmatpush.bf16.msra.mxu0 %v317_v43  ;;  %608 = vmatpush.bf16.msra.mxu1 %v320_v44 }
  0x27   : > { %2003 = vmatmul.msk.bf16.gmra.mxu0 %vm278_vm1, %v2257_v29  ;;  %2007 = vmatmul.msk.bf16.gmra.mxu1 %vm278_vm1, %v2257_v29 }
  0x28   : > { %2011 = vmatmul.msk.bf16.gmra.mxu2 %vm278_vm1, %v2257_v29  ;;  %2015 = vmatmul.msk.bf16.gmra.mxu3 %vm278_vm1, %v2257_v29 }
  0x37   : > { %2004 = vmatmul.msk.bf16.gmra.mxu0 %vm278_vm1, %v2270_v30  ;;  %2008 = vmatmul.msk.bf16.gmra.mxu1 %vm278_vm1, %v2270_v30 }
  0x38   : > { %2012 = vmatmul.msk.bf16.gmra.mxu2 %vm278_vm1, %v2270_v30  ;;  %2016 = vmatmul.msk.bf16.gmra.mxu3 %vm278_vm1, %v2270_v30 }
  0x47   : > { %2005 = vmatmul.msk.bf16.gmra.mxu0 %vm278_vm1, %v2289_v45  ;;  %2009 = vmatmul.msk.bf16.gmra.mxu1 %vm278_vm1, %v2289_v45 }
  0x48   : > { %2013 = vmatmul.msk.bf16.gmra.mxu2 %vm278_vm1, %v2289_v45  ;;  %2017 = vmatmul.msk.bf16.gmra.mxu3 %vm278_vm1, %v2289_v45 }
  0x57   : > { %2018 = vmatmul.msk.bf16.vlgmr.msrb.gmra.mxu0 %vm278_vm1, %v2240_v24  ;;  %2022 = vmatmul.msk.bf16.vlgmr.msrb.gmra.mxu1 %vm278_vm1, %v2240_v24 }
  0x58   : > { %2026 = vmatmul.msk.bf16.vlgmr.msrb.gmra.mxu2 %vm278_vm1, %v2240_v24  ;;  %2030 = vmatmul.msk.bf16.vlgmr.msrb.gmra.mxu3 %vm278_vm1, %v2240_v24 }
  0x59   : > { %753 = vmatpush.bf16.msrb.mxu2 %v335_v51  ;;  %782 = vmatpush.bf16.msrb.mxu3 %v338_v52 }
  0x5a   : > { %695 = vmatpush.bf16.msrb.mxu0 %v329_v58  ;;  %724 = vmatpush.bf16.msrb.mxu1 %v332_v59 }
  0x67   : > { %2019 = vmatmul.msk.bf16.gmra.mxu0 %vm278_vm1, %v2257_v29  ;;  %2023 = vmatmul.msk.bf16.gmra.mxu1 %vm278_vm1, %v2257_v29 }
  0x68   : > { %2027 = vmatmul.msk.bf16.gmra.mxu2 %vm278_vm1, %v2257_v29  ;;  %2031 = vmatmul.msk.bf16.gmra.mxu3 %vm278_vm1, %v2257_v29 }
  0x77   : > { %2020 = vmatmul.msk.bf16.gmra.mxu0 %vm278_vm1, %v2270_v30  ;;  %2024 = vmatmul.msk.bf16.gmra.mxu1 %vm278_vm1, %v2270_v30 }
  0x78   : > { %2028 = vmatmul.msk.bf16.gmra.mxu2 %vm278_vm1, %v2270_v30  ;;  %2032 = vmatmul.msk.bf16.gmra.mxu3 %vm278_vm1, %v2270_v30 }
  0x87   : > { %2021 = vmatmul.msk.bf16.gmra.mxu0 %vm278_vm1, %v2289_v45  ;;  %2025 = vmatmul.msk.bf16.gmra.mxu1 %vm278_vm1, %v2289_v45 }
  0x88   : > { %2029 = vmatmul.msk.bf16.gmra.mxu2 %vm278_vm1, %v2289_v45  ;;  %2033 = vmatmul.msk.bf16.gmra.mxu3 %vm278_vm1, %v2289_v45 }
  0x94   : > { %v2337_v60 = vpop.f32.mrf.mxu0  ;;  %v2339_v61 = vpop.f32.mrf.mxu1 }
  0x95   : > { %v804_v56 = vmax.f32 %v2337_v60, 0.0  ;;  %v805_v57 = vmax.f32 %v2339_v61, 0.0 }
  0x97   : > { %2034 = vmatmul.msk.bf16.vlgmr.msra.gmra.mxu0 %vm278_vm1, %v2240_v24  ;;  %2038 = vmatmul.msk.bf16.vlgmr.msra.gmra.mxu1 %vm278_vm1, %v2240_v24 }
  0x98   : > { %2042 = vmatmul.msk.bf16.vlgmr.msra.gmra.mxu2 %vm278_vm1, %v2240_v24  ;;  %2046 = vmatmul.msk.bf16.vlgmr.msra.gmra.mxu3 %vm278_vm1, %v2240_v24 }
  0x9b   : > { %v2349_v62 = vpop.f32.mrf.mxu2  ;;  %v2351_v63 = vpop.f32.mrf.mxu3 }
  0x9c   : > { %v2353_v0 = vpop.f32.mrf.mxu0  ;;  %v2355_v1 = vpop.f32.mrf.mxu1 }
  0xa3   : > { %v2357_v2 = vpop.f32.mrf.mxu2  ;;  %v2359_v3 = vpop.f32.mrf.mxu3 }
  0xa4   : > { %v2361_v4 = vpop.f32.mrf.mxu0  ;;  %v2363_v5 = vpop.f32.mrf.mxu1 }
  0xa5   : > { %v836_v39 = vmax.f32 %v2361_v4, 0.0  ;;  %v837_v40 = vmax.f32 %v2363_v5, 0.0  ;;  %v820_v4 = vmax.f32 %v2353_v0, 0.0  ;;  %v821_v5 = vmax.f32 %v2355_v1, 0.0 }
  0xa7   : > { %2035 = vmatmul.msk.bf16.gmra.mxu0 %vm278_vm1, %v2257_v29  ;;  %2039 = vmatmul.msk.bf16.gmra.mxu1 %vm278_vm1, %v2257_v29 }
  0xa8   : > { %2043 = vmatmul.msk.bf16.gmra.mxu2 %vm278_vm1, %v2257_v29  ;;  %2047 = vmatmul.msk.bf16.gmra.mxu3 %vm278_vm1, %v2257_v29 }
  0xab   : > { %v2373_v6 = vpop.f32.mrf.mxu2  ;;  %v2375_v7 = vpop.f32.mrf.mxu3 }
  0xac   : > { %v2377_v8 = vpop.f32.mrf.mxu0  ;;  %v2379_v9 = vpop.f32.mrf.mxu1 }
  0xad   : > { %v852_v41 = vmax.f32 %v2377_v8, 0.0  ;;  %v853_v42 = vmax.f32 %v2379_v9, 0.0 }
  0xaf   : > { %v948_v8 = vpack.c.bf16 %v852_v41, %v836_v39  ;;  %v949_v9 = vpack.c.bf16 %v853_v42, %v837_v40 }
  0xb3   : > { %v2381_v10 = vpop.f32.mrf.mxu2  ;;  %v2383_v11 = vpop.f32.mrf.mxu3 }
  0xb4   : > { %v359_v12 = vpop.f32.mrf.mxu0  ;;  %v388_v13 = vpop.f32.mrf.mxu1  ;;  %v854_v0 = vmax.f32 %v2381_v10, 0.0  ;;  %v855_v1 = vmax.f32 %v2383_v11, 0.0  ;;  %v822_v10 = vmax.f32 %v2357_v2, 0.0  ;;  %v823_v11 = vmax.f32 %v2359_v3, 0.0 }
  0xb5   : > { %v868_v33 = vmax.f32 %v359_v12, 0.0  ;;  %v869_v34 = vmax.f32 %v388_v13, 0.0 }
  0xb7   : > { %2036 = vmatmul.msk.bf16.gmra.mxu0 %vm278_vm1, %v2270_v30  ;;  %2040 = vmatmul.msk.bf16.gmra.mxu1 %vm278_vm1, %v2270_v30 }
  0xb8   : > { %2044 = vmatmul.msk.bf16.gmra.mxu2 %vm278_vm1, %v2270_v30  ;;  %2048 = vmatmul.msk.bf16.gmra.mxu3 %vm278_vm1, %v2270_v30 }
  0xbb   : > { %v2393_v14 = vpop.f32.mrf.mxu2  ;;  %v2395_v15 = vpop.f32.mrf.mxu3 }
  0xbc   : > { %v361_v16 = vpop.f32.mrf.mxu0  ;;  %v390_v17 = vpop.f32.mrf.mxu1  ;;  %v870_v60 = vmax.f32 %v2393_v14, 0.0  ;;  %v871_v61 = vmax.f32 %v2395_v15, 0.0  ;;  %v838_v15 = vmax.f32 %v2373_v6, 0.0 }
  0xbd   : > { %v884_v35 = vmax.f32 %v361_v16, 0.0  ;;  %v885_v36 = vmax.f32 %v390_v17, 0.0 }
  0xbf   : > { %v964_v43 = vpack.c.bf16 %v884_v35, %v868_v33  ;;  %v965_v44 = vpack.c.bf16 %v885_v36, %v869_v34 }
  0xc3   : > { %v2397_v18 = vpop.f32.mrf.mxu2  ;;  %v2399_v19 = vpop.f32.mrf.mxu3 }
  0xc4   : > { %v364_v20 = vpop.f32.mrf.mxu0  ;;  %v393_v21 = vpop.f32.mrf.mxu1  ;;  %v886_v58 = vmax.f32 %v2397_v18, 0.0  ;;  %v887_v59 = vmax.f32 %v2399_v19, 0.0  ;;  %v932_v18 = vpack.c.bf16 %v820_v4, %v804_v56 }
  0xc5   : > { %v900_v22 = vmax.f32 %v364_v20, 0.0  ;;  %v901_v23 = vmax.f32 %v393_v21, 0.0  ;;  %v839_v20 = vmax.f32 %v2375_v7, 0.0  ;;  %v950_v21 = vpack.c.bf16 %v854_v0, %v838_v15  ;;  %v2508_v0 = vld [vmem:[%s3057_s2] sm:$0xff] }
  0xc6   : > { %v966_v12 = vpack.c.bf16 %v886_v58, %v870_v60  ;;  %v967_v13 = vpack.c.bf16 %v887_v59, %v871_v61 }
  0xc7   : > { %2037 = vmatmul.msk.bf16.gmra.mxu0 %vm278_vm1, %v2289_v45  ;;  %2041 = vmatmul.msk.bf16.gmra.mxu1 %vm278_vm1, %v2289_v45 }
  0xc8   : > { %2045 = vmatmul.msk.bf16.gmra.mxu2 %vm278_vm1, %v2289_v45  ;;  %2049 = vmatmul.msk.bf16.gmra.mxu3 %vm278_vm1, %v2289_v45 }
  0xcb   : > { %v422_v25 = vpop.f32.mrf.mxu2  ;;  %v451_v26 = vpop.f32.mrf.mxu3 }
  0xcc   : > { %v366_v27 = vpop.f32.mrf.mxu0  ;;  %v395_v28 = vpop.f32.mrf.mxu1  ;;  %v902_v48 = vmax.f32 %v422_v25, 0.0  ;;  %v903_v49 = vmax.f32 %v451_v26, 0.0  ;;  %v807_v25 = vmax.f32 %v2351_v63, 0.0 }
  0xcd   : > { %v916_v31 = vmax.f32 %v366_v27, 0.0  ;;  %v917_v32 = vmax.f32 %v395_v28, 0.0 }
  0xce   : > { %v935_v6 = vpack.c.bf16 %v823_v11, %v807_v25 }
  0xcf   : > { %v980_v37 = vpack.c.bf16 %v916_v31, %v900_v22  ;;  %v981_v38 = vpack.c.bf16 %v917_v32, %v901_v23  ;;  %v951_v22 = vpack.c.bf16 %v855_v1, %v839_v20  ;;  %v806_v23 = vmax.f32 %v2349_v62, 0.0 }
  0xd1   : > { %1041 = vmatpush.bf16.msra.mxu0 %v980_v37  ;;  %1070 = vmatpush.bf16.msra.mxu1 %v981_v38  ;;  %v934_v26 = vpack.c.bf16 %v822_v10, %v806_v23 }
  0xd3   : > { %v424_v46 = vpop.f32.mrf.mxu2  ;;  %v453_v47 = vpop.f32.mrf.mxu3 }
  0xd4   : > { %v918_v50 = vmax.f32 %v424_v46, 0.0  ;;  %v919_v51 = vmax.f32 %v453_v47, 0.0  ;;  %v2413_v52 = vpop.f32.mrf.mxu0  ;;  %v2415_v53 = vpop.f32.mrf.mxu1 }
  0xd5   : > { %1042 = vmatpush.bf16.msra.mxu0 %v964_v43  ;;  %1071 = vmatpush.bf16.msra.mxu1 %v965_v44  ;;  %v808_v11 = vmax.f32 %v2413_v52, 0.0 }
  0xd6   : > { %v982_v54 = vpack.c.bf16 %v918_v50, %v902_v48  ;;  %v983_v55 = vpack.c.bf16 %v919_v51, %v903_v49 }
  0xd7   : > { %2050 = vmatmul.msk.bf16.vlgmr.msrb.gmra.mxu0 %vm278_vm1, %v2240_v24  ;;  %2054 = vmatmul.msk.bf16.vlgmr.msrb.gmra.mxu1 %vm278_vm1, %v2240_v24 }
  0xd8   : > { %2058 = vmatmul.msk.bf16.vlgmr.msrb.gmra.mxu2 %vm278_vm1, %v2240_v24  ;;  %2062 = vmatmul.msk.bf16.vlgmr.msrb.gmra.mxu3 %vm278_vm1, %v2240_v24  ;;  %v933_v24 = vpack.c.bf16 %v821_v5, %v805_v57 }
  0xd9   : > { %1099 = vmatpush.bf16.msra.mxu2 %v982_v54  ;;  %1128 = vmatpush.bf16.msra.mxu3 %v983_v55 }
  0xda   : > { %1043 = vmatpush.bf16.msra.mxu0 %v948_v8  ;;  %1072 = vmatpush.bf16.msra.mxu1 %v949_v9 }
  0xdb   : > { %v2435_v16 = vpop.f32.mrf.mxu2  ;;  %v2437_v17 = vpop.f32.mrf.mxu3 }
  0xdc   : > { %v2439_v19 = vpop.f32.mrf.mxu0  ;;  %v2441_v14 = vpop.f32.mrf.mxu1 }
  0xdd   : > { %1100 = vmatpush.bf16.msra.mxu2 %v966_v12  ;;  %1129 = vmatpush.bf16.msra.mxu3 %v967_v13  ;;  %v824_v25 = vmax.f32 %v2439_v19, 0.0 }
  0xde   : > { %1044 = vmatpush.bf16.msra.mxu0 %v932_v18  ;;  %1073 = vmatpush.bf16.msra.mxu1 %v933_v24 }
  0xe1   : > { %1101 = vmatpush.bf16.msra.mxu2 %v950_v21  ;;  %1130 = vmatpush.bf16.msra.mxu3 %v951_v22  ;;  %v809_v21 = vmax.f32 %v2415_v53, 0.0 }
  0xe3   : > { %v2449_v27 = vpop.f32.mrf.mxu2  ;;  %v2451_v7 = vpop.f32.mrf.mxu3 }
  0xe4   : > { %v2453_v28 = vpop.f32.mrf.mxu0  ;;  %v2455_v31 = vpop.f32.mrf.mxu1 }
  0xe5   : > { %1102 = vmatpush.bf16.msra.mxu2 %v934_v26  ;;  %1131 = vmatpush.bf16.msra.mxu3 %v935_v6  ;;  %v840_v59 = vmax.f32 %v2453_v28, 0.0  ;;  %v825_v26 = vmax.f32 %v2441_v14, 0.0 }
  0xe7   : > { %2051 = vmatmul.msk.bf16.gmra.mxu0 %vm278_vm1, %v2257_v29  ;;  %2055 = vmatmul.msk.bf16.gmra.mxu1 %vm278_vm1, %v2257_v29 }
  0xe8   : > { %2059 = vmatmul.msk.bf16.gmra.mxu2 %vm278_vm1, %v2257_v29  ;;  %2063 = vmatmul.msk.bf16.gmra.mxu3 %vm278_vm1, %v2257_v29 }
  0xeb   : > { %v2465_v62 = vpop.f32.mrf.mxu2  ;;  %v2467_v63 = vpop.f32.mrf.mxu3 }
  0xec   : > { %v2469_v2 = vpop.f32.mrf.mxu0  ;;  %v2471_v3 = vpop.f32.mrf.mxu1 }
  0xed   : > { %v856_v4 = vmax.f32 %v2469_v2, 0.0  ;;  %v857_v5 = vmax.f32 %v2471_v3, 0.0 }
  0xef   : > { %v952_v6 = vpack.c.bf16 %v856_v4, %v840_v59 }
  0xf3   : > { %v2473_v32 = vpop.f32.mrf.mxu2  ;;  %v2475_v33 = vpop.f32.mrf.mxu3 }
  0xf4   : > { %v475_v34 = vpop.f32.mrf.mxu0  ;;  %v504_v35 = vpop.f32.mrf.mxu1  ;;  %v858_v19 = vmax.f32 %v2473_v32, 0.0  ;;  %v859_v14 = vmax.f32 %v2475_v33, 0.0  ;;  %v826_v32 = vmax.f32 %v2449_v27, 0.0  ;;  %v827_v33 = vmax.f32 %v2451_v7, 0.0  ;;  %v2553_v27 = vld [vmem:[%s3057_s2 + $0x8] sm:$0xff] }
  0xf5   : > { %v872_v51 = vmax.f32 %v475_v34, 0.0  ;;  %v873_v54 = vmax.f32 %v504_v35, 0.0  ;;  %v936_v35 = vpack.c.bf16 %v824_v25, %v808_v11 }
  0xf7   : > { %2052 = vmatmul.msk.bf16.gmra.mxu0 %vm278_vm1, %v2270_v30  ;;  %2056 = vmatmul.msk.bf16.gmra.mxu1 %vm278_vm1, %v2270_v30 }
  0xf8   : > { %2060 = vmatmul.msk.bf16.gmra.mxu2 %vm278_vm1, %v2270_v30  ;;  %2064 = vmatmul.msk.bf16.gmra.mxu3 %vm278_vm1, %v2270_v30 }
  0xfb   : > { %v2485_v29 = vpop.f32.mrf.mxu2  ;;  %v2487_v36 = vpop.f32.mrf.mxu3 }
  0xfc   : > { %v477_v37 = vpop.f32.mrf.mxu0  ;;  %v506_v38 = vpop.f32.mrf.mxu1  ;;  %v874_v52 = vmax.f32 %v2485_v29, 0.0  ;;  %v875_v53 = vmax.f32 %v2487_v36, 0.0  ;;  %v842_v36 = vmax.f32 %v2465_v62, 0.0 }
  0xfd   : > { %v888_v55 = vmax.f32 %v477_v37, 0.0  ;;  %v889_v56 = vmax.f32 %v506_v38, 0.0  ;;  %v937_v37 = vpack.c.bf16 %v825_v26, %v809_v21 }
  0xff   : > { %v968_v8 = vpack.c.bf16 %v888_v55, %v872_v51  ;;  %v969_v9 = vpack.c.bf16 %v889_v56, %v873_v54  ;;  %v2582_v51 = vld [vmem:[%s3057_s2 + $0x10] sm:$0xff] }
 0x103   : > { %v2489_v39 = vpop.f32.mrf.mxu2  ;;  %v2491_v40 = vpop.f32.mrf.mxu3 }
 0x104   : > { %v480_v41 = vpop.f32.mrf.mxu0  ;;  %v509_v42 = vpop.f32.mrf.mxu1  ;;  %v890_v22 = vmax.f32 %v2489_v39, 0.0  ;;  %v891_v23 = vmax.f32 %v2491_v40, 0.0  ;;  %v843_v39 = vmax.f32 %v2467_v63, 0.0  ;;  %v954_v40 = vpack.c.bf16 %v858_v19, %v842_v36 }
 0x105   : > { %v904_v30 = vmax.f32 %v480_v41, 0.0  ;;  %v905_v43 = vmax.f32 %v509_v42, 0.0  ;;  %v810_v42 = vmax.f32 %v2435_v16, 0.0 }
 0x106   : > { %v971_v2 = vpack.c.bf16 %v891_v23, %v875_v53  ;;  %v955_v41 = vpack.c.bf16 %v859_v14, %v843_v39 }
 0x107   : > { %2053 = vmatmul.msk.bf16.gmra.mxu0 %vm278_vm1, %v2289_v45  ;;  %2057 = vmatmul.msk.bf16.gmra.mxu1 %vm278_vm1, %v2289_v45 }
 0x108   : > { %2061 = vmatmul.msk.bf16.gmra.mxu2 %vm278_vm1, %v2289_v45  ;;  %2065 = vmatmul.msk.bf16.gmra.mxu3 %vm278_vm1, %v2289_v45  ;;  %v841_v45 = vmax.f32 %v2455_v31, 0.0  ;;  %v970_v31 = vpack.c.bf16 %v890_v22, %v874_v52 }
 0x10a   : > { %v953_v28 = vpack.c.bf16 %v857_v5, %v841_v45  ;;  %v2603_v5 = vld [vmem:[%s3057_s2 + $0x18] sm:$0xff] }
 0x10b   : > { %v538_v44 = vpop.f32.mrf.mxu2  ;;  %v567_v46 = vpop.f32.mrf.mxu3 }
 0x10c   : > { %v482_v47 = vpop.f32.mrf.mxu0  ;;  %v511_v48 = vpop.f32.mrf.mxu1  ;;  %v906_v1 = vmax.f32 %v538_v44, 0.0  ;;  %v907_v12 = vmax.f32 %v567_v46, 0.0 }
 0x10d   : > { %v920_v49 = vmax.f32 %v482_v47, 0.0  ;;  %v921_v50 = vmax.f32 %v511_v48, 0.0 }
 0x10f   : > { %v984_v57 = vpack.c.bf16 %v920_v49, %v904_v30  ;;  %v985_v58 = vpack.c.bf16 %v921_v50, %v905_v43  ;;  %v811_v30 = vmax.f32 %v2437_v17, 0.0  ;;  %v938_v43 = vpack.c.bf16 %v826_v32, %v810_v42 }
 0x111   : > { %1157 = vmatpush.bf16.msrb.mxu0 %v984_v57  ;;  %1186 = vmatpush.bf16.msrb.mxu1 %v985_v58  ;;  %v939_v62 = vpack.c.bf16 %v827_v33, %v811_v30 }
 0x113   : > { %v540_v60 = vpop.f32.mrf.mxu2  ;;  %v569_v61 = vpop.f32.mrf.mxu3 }
 0x114   : > { %v922_v13 = vmax.f32 %v540_v60, 0.0  ;;  %v923_v18 = vmax.f32 %v569_v61, 0.0  ;;  %v2510_v24 = vpop.f32.mrf.mxu0  ;;  %v2512_v15 = vpop.f32.mrf.mxu1 }
 0x115   : > { %1158 = vmatpush.bf16.msrb.mxu0 %v968_v8  ;;  %1187 = vmatpush.bf16.msrb.mxu1 %v969_v9  ;;  %v812_v42 = vmax.f32 %v2510_v24, 0.0  ;;  %v813_v30 = vmax.f32 %v2512_v15, 0.0 }
 0x116   : > { %v986_v20 = vpack.c.bf16 %v922_v13, %v906_v1  ;;  %v987_v10 = vpack.c.bf16 %v923_v18, %v907_v12 }
 0x117   : > { %2082 = vmatmul.msk.bf16.vlgmr.msra.gmra.mxu0 %vm1024_vm2, %v2508_v0  ;;  %2086 = vmatmul.msk.bf16.vlgmr.msra.gmra.mxu1 %vm1024_vm2, %v2508_v0 }
 0x118   : > { %2090 = vmatmul.msk.bf16.vlgmr.msra.gmra.mxu2 %vm1024_vm2, %v2508_v0  ;;  %2094 = vmatmul.msk.bf16.vlgmr.msra.gmra.mxu3 %vm1024_vm2, %v2508_v0 }
 0x119   : > { %1215 = vmatpush.bf16.msrb.mxu2 %v986_v20  ;;  %1244 = vmatpush.bf16.msrb.mxu3 %v987_v10 }
 0x11a   : > { %1159 = vmatpush.bf16.msrb.mxu0 %v952_v6  ;;  %1188 = vmatpush.bf16.msrb.mxu1 %v953_v28 }
 0x11b   : > { %v2532_v3 = vpop.f32.mrf.mxu2  ;;  %v2534_v34 = vpop.f32.mrf.mxu3 }
 0x11c   : > { %v2536_v38 = vpop.f32.mrf.mxu0  ;;  %v2538_v29 = vpop.f32.mrf.mxu1 }
 0x11d   : > { %1216 = vmatpush.bf16.msrb.mxu2 %v970_v31  ;;  %1245 = vmatpush.bf16.msrb.mxu3 %v971_v2 }
 0x11e   : > { %1160 = vmatpush.bf16.msrb.mxu0 %v936_v35  ;;  %1189 = vmatpush.bf16.msrb.mxu1 %v937_v37 }
 0x121   : > { %1217 = vmatpush.bf16.msrb.mxu2 %v954_v40  ;;  %1246 = vmatpush.bf16.msrb.mxu3 %v955_v41 }
 0x123   : > { %v2546_v44 = vpop.f32.mrf.mxu2  ;;  %v2548_v63 = vpop.f32.mrf.mxu3 }
 0x124   : > { %v2555_v7 = vpop.f32.mrf.mxu0  ;;  %v2557_v46 = vpop.f32.mrf.mxu1 }
 0x125   : > { %1218 = vmatpush.bf16.msrb.mxu2 %v938_v43  ;;  %1247 = vmatpush.bf16.msrb.mxu3 %v939_v62  ;;  %v844_v6 = vmax.f32 %v2555_v7, 0.0  ;;  %v845_v28 = vmax.f32 %v2557_v46, 0.0  ;;  %v828_v7 = vmax.f32 %v2536_v38, 0.0  ;;  %v829_v46 = vmax.f32 %v2538_v29, 0.0 }
 0x127   : > { %2083 = vmatmul.msk.bf16.gmra.mxu0 %vm1024_vm2, %v2553_v27  ;;  %2087 = vmatmul.msk.bf16.gmra.mxu1 %vm1024_vm2, %v2553_v27 }
 0x128   : > { %2091 = vmatmul.msk.bf16.gmra.mxu2 %vm1024_vm2, %v2553_v27  ;;  %2095 = vmatmul.msk.bf16.gmra.mxu3 %vm1024_vm2, %v2553_v27 }
 0x12b   : > { %v2567_v16 = vpop.f32.mrf.mxu2  ;;  %v2569_v17 = vpop.f32.mrf.mxu3 }
 0x12c   : > { %v2571_v47 = vpop.f32.mrf.mxu0  ;;  %v2573_v48 = vpop.f32.mrf.mxu1 }
 0x12d   : > { %v860_v52 = vmax.f32 %v2571_v47, 0.0  ;;  %v861_v53 = vmax.f32 %v2573_v48, 0.0 }
 0x12f   : > { %v956_v47 = vpack.c.bf16 %v860_v52, %v844_v6  ;;  %v957_v48 = vpack.c.bf16 %v861_v53, %v845_v28 }
 0x133   : > { %v2575_v49 = vpop.f32.mrf.mxu2  ;;  %v2577_v50 = vpop.f32.mrf.mxu3 }
 0x134   : > { %v591_v54 = vpop.f32.mrf.mxu0  ;;  %v620_v55 = vpop.f32.mrf.mxu1  ;;  %v862_v38 = vmax.f32 %v2575_v49, 0.0  ;;  %v863_v29 = vmax.f32 %v2577_v50, 0.0  ;;  %v830_v49 = vmax.f32 %v2546_v44, 0.0  ;;  %v831_v50 = vmax.f32 %v2548_v63, 0.0 }
 0x135   : > { %v876_v11 = vmax.f32 %v591_v54, 0.0  ;;  %v877_v21 = vmax.f32 %v620_v55, 0.0 }
 0x137   : > { %2084 = vmatmul.msk.bf16.gmra.mxu0 %vm1024_vm2, %v2582_v51  ;;  %2088 = vmatmul.msk.bf16.gmra.mxu1 %vm1024_vm2, %v2582_v51 }
 0x138   : > { %2092 = vmatmul.msk.bf16.gmra.mxu2 %vm1024_vm2, %v2582_v51  ;;  %2096 = vmatmul.msk.bf16.gmra.mxu3 %vm1024_vm2, %v2582_v51 }
 0x13b   : > { %v2592_v56 = vpop.f32.mrf.mxu2  ;;  %v2594_v57 = vpop.f32.mrf.mxu3 }
 0x13c   : > { %v593_v58 = vpop.f32.mrf.mxu0  ;;  %v622_v59 = vpop.f32.mrf.mxu1  ;;  %v878_v24 = vmax.f32 %v2592_v56, 0.0  ;;  %v879_v15 = vmax.f32 %v2594_v57, 0.0  ;;  %v846_v57 = vmax.f32 %v2567_v16, 0.0 }
 0x13d   : > { %v892_v22 = vmax.f32 %v593_v58, 0.0  ;;  %v893_v23 = vmax.f32 %v622_v59, 0.0 }
 0x13f   : > { %v972_v19 = vpack.c.bf16 %v892_v22, %v876_v11  ;;  %v973_v14 = vpack.c.bf16 %v893_v23, %v877_v21 }
 0x143   : > { %v2596_v45 = vpop.f32.mrf.mxu2  ;;  %v2598_v4 = vpop.f32.mrf.mxu3 }
 0x144   : > { %v596_v8 = vpop.f32.mrf.mxu0  ;;  %v625_v9 = vpop.f32.mrf.mxu1  ;;  %v894_v43 = vmax.f32 %v2596_v45, 0.0  ;;  %v895_v62 = vmax.f32 %v2598_v4, 0.0  ;;  %v940_v45 = vpack.c.bf16 %v828_v7, %v812_v42  ;;  %v941_v4 = vpack.c.bf16 %v829_v46, %v813_v30 }
 0x145   : > { %v908_v60 = vmax.f32 %v596_v8, 0.0  ;;  %v909_v61 = vmax.f32 %v625_v9, 0.0  ;;  %v847_v9 = vmax.f32 %v2569_v17, 0.0 }
 0x146   : > { %v974_v54 = vpack.c.bf16 %v894_v43, %v878_v24  ;;  %v975_v55 = vpack.c.bf16 %v895_v62, %v879_v15 }
 0x147   : > { %2085 = vmatmul.msk.bf16.gmra.mxu0 %vm1024_vm2, %v2603_v5  ;;  %2089 = vmatmul.msk.bf16.gmra.mxu1 %vm1024_vm2, %v2603_v5 }
 0x148   : > { %2093 = vmatmul.msk.bf16.gmra.mxu2 %vm1024_vm2, %v2603_v5  ;;  %2097 = vmatmul.msk.bf16.gmra.mxu3 %vm1024_vm2, %v2603_v5 }
 0x14b   : > { %v654_v1 = vpop.f32.mrf.mxu2  ;;  %v683_v12 = vpop.f32.mrf.mxu3 }
 0x14c   : > { %v598_v13 = vpop.f32.mrf.mxu0  ;;  %v627_v18 = vpop.f32.mrf.mxu1  ;;  %v910_v35 = vmax.f32 %v654_v1, 0.0  ;;  %v911_v37 = vmax.f32 %v683_v12, 0.0  ;;  %v814_v1 = vmax.f32 %v2532_v3, 0.0  ;;  %v815_v12 = vmax.f32 %v2534_v34, 0.0 }
 0x14d   : > { %v924_v20 = vmax.f32 %v598_v13, 0.0  ;;  %v925_v10 = vmax.f32 %v627_v18, 0.0 }
 0x14e   : > { %v942_v13 = vpack.c.bf16 %v830_v49, %v814_v1  ;;  %v943_v16 = vpack.c.bf16 %v831_v50, %v815_v12 }
 0x14f   : > { %v988_v25 = vpack.c.bf16 %v924_v20, %v908_v60  ;;  %v989_v26 = vpack.c.bf16 %v925_v10, %v909_v61  ;;  %v958_v60 = vpack.c.bf16 %v862_v38, %v846_v57  ;;  %v959_v61 = vpack.c.bf16 %v863_v29, %v847_v9 }
 0x151   : > { %1273 = vmatpush.bf16.msra.mxu0 %v988_v25  ;;  %1302 = vmatpush.bf16.msra.mxu1 %v989_v26 }
 0x153   : > { %v656_v31 = vpop.f32.mrf.mxu2  ;;  %v685_v2 = vpop.f32.mrf.mxu3 }
 0x154   : > { %v926_v36 = vmax.f32 %v656_v31, 0.0  ;;  %v927_v39 = vmax.f32 %v685_v2, 0.0  ;;  %v2617_v32 = vpop.f32.mrf.mxu0  ;;  %v2619_v33 = vpop.f32.mrf.mxu1 }
 0x155   : > { %1274 = vmatpush.bf16.msra.mxu0 %v972_v19  ;;  %1303 = vmatpush.bf16.msra.mxu1 %v973_v14  ;;  %v816_v1 = vmax.f32 %v2617_v32, 0.0  ;;  %v817_v12 = vmax.f32 %v2619_v33, 0.0 }
 0x156   : > { %v990_v40 = vpack.c.bf16 %v926_v36, %v910_v35  ;;  %v991_v41 = vpack.c.bf16 %v927_v39, %v911_v37 }
 0x157   : > { %2098 = vmatmul.msk.bf16.vlgmr.msrb.gmra.mxu0 %vm1024_vm2, %v2508_v0  ;;  %2102 = vmatmul.msk.bf16.vlgmr.msrb.gmra.mxu1 %vm1024_vm2, %v2508_v0 }
 0x158   : > { %2106 = vmatmul.msk.bf16.vlgmr.msrb.gmra.mxu2 %vm1024_vm2, %v2508_v0  ;;  %2110 = vmatmul.msk.bf16.vlgmr.msrb.gmra.mxu3 %vm1024_vm2, %v2508_v0 }
 0x159   : > { %1331 = vmatpush.bf16.msra.mxu2 %v990_v40  ;;  %1360 = vmatpush.bf16.msra.mxu3 %v991_v41 }
 0x15a   : > { %1275 = vmatpush.bf16.msra.mxu0 %v956_v47  ;;  %1304 = vmatpush.bf16.msra.mxu1 %v957_v48 }
 0x15b   : > { %v2639_v58 = vpop.f32.mrf.mxu2  ;;  %v2641_v59 = vpop.f32.mrf.mxu3 }
 0x15c   : > { %v2643_v8 = vpop.f32.mrf.mxu0  ;;  %v2645_v56 = vpop.f32.mrf.mxu1 }
 0x15d   : > { %1332 = vmatpush.bf16.msra.mxu2 %v974_v54  ;;  %1361 = vmatpush.bf16.msra.mxu3 %v975_v55 }
 0x15e   : > { %1276 = vmatpush.bf16.msra.mxu0 %v940_v45  ;;  %1305 = vmatpush.bf16.msra.mxu1 %v941_v4 }
 0x161   : > { %1333 = vmatpush.bf16.msra.mxu2 %v958_v60  ;;  %1362 = vmatpush.bf16.msra.mxu3 %v959_v61 }
 0x163   : > { %v2653_v18 = vpop.f32.mrf.mxu2  ;;  %v2655_v17 = vpop.f32.mrf.mxu3 }
 0x164   : > { %v2657_v20 = vpop.f32.mrf.mxu0  ;;  %v2659_v10 = vpop.f32.mrf.mxu1 }
 0x165   : > { %1334 = vmatpush.bf16.msra.mxu2 %v942_v13  ;;  %1363 = vmatpush.bf16.msra.mxu3 %v943_v16  ;;  %v848_v47 = vmax.f32 %v2657_v20, 0.0  ;;  %v849_v48 = vmax.f32 %v2659_v10, 0.0  ;;  %v832_v20 = vmax.f32 %v2643_v8, 0.0  ;;  %v833_v10 = vmax.f32 %v2645_v56, 0.0 }
 0x167   : > { %2099 = vmatmul.msk.bf16.gmra.mxu0 %vm1024_vm2, %v2553_v27  ;;  %2103 = vmatmul.msk.bf16.gmra.mxu1 %vm1024_vm2, %v2553_v27 }
 0x168   : > { %2107 = vmatmul.msk.bf16.gmra.mxu2 %vm1024_vm2, %v2553_v27  ;;  %2111 = vmatmul.msk.bf16.gmra.mxu3 %vm1024_vm2, %v2553_v27 }
 0x16b   : > { %v2669_v3 = vpop.f32.mrf.mxu2  ;;  %v2671_v34 = vpop.f32.mrf.mxu3 }
 0x16c   : > { %v2673_v44 = vpop.f32.mrf.mxu0  ;;  %v2675_v63 = vpop.f32.mrf.mxu1 }
 0x16d   : > { %v864_v24 = vmax.f32 %v2673_v44, 0.0  ;;  %v865_v15 = vmax.f32 %v2675_v63, 0.0 }
 0x16f   : > { %v960_v44 = vpack.c.bf16 %v864_v24, %v848_v47  ;;  %v961_v63 = vpack.c.bf16 %v865_v15, %v849_v48 }
 0x173   : > { %v2677_v11 = vpop.f32.mrf.mxu2  ;;  %v2679_v21 = vpop.f32.mrf.mxu3 }
 0x174   : > { %v707_v22 = vpop.f32.mrf.mxu0  ;;  %v736_v23 = vpop.f32.mrf.mxu1  ;;  %v866_v8 = vmax.f32 %v2677_v11, 0.0  ;;  %v867_v56 = vmax.f32 %v2679_v21, 0.0  ;;  %v834_v11 = vmax.f32 %v2653_v18, 0.0  ;;  %v835_v21 = vmax.f32 %v2655_v17, 0.0 }
 0x175   : > { %v880_v42 = vmax.f32 %v707_v22, 0.0  ;;  %v881_v30 = vmax.f32 %v736_v23, 0.0 }
 0x177   : > { %2100 = vmatmul.msk.bf16.gmra.mxu0 %vm1024_vm2, %v2582_v51  ;;  %2104 = vmatmul.msk.bf16.gmra.mxu1 %vm1024_vm2, %v2582_v51 }
 0x178   : > { %2108 = vmatmul.msk.bf16.gmra.mxu2 %vm1024_vm2, %v2582_v51  ;;  %2112 = vmatmul.msk.bf16.gmra.mxu3 %vm1024_vm2, %v2582_v51 }
 0x17b   : > { %v2689_v25 = vpop.f32.mrf.mxu2  ;;  %v2691_v26 = vpop.f32.mrf.mxu3 }
 0x17c   : > { %v709_v6 = vpop.f32.mrf.mxu0  ;;  %v738_v28 = vpop.f32.mrf.mxu1  ;;  %v882_v32 = vmax.f32 %v2689_v25, 0.0  ;;  %v883_v33 = vmax.f32 %v2691_v26, 0.0  ;;  %v850_v26 = vmax.f32 %v2669_v3, 0.0 }
 0x17d   : > { %v896_v43 = vmax.f32 %v709_v6, 0.0  ;;  %v897_v62 = vmax.f32 %v738_v28, 0.0 }
 0x17f   : > { %v976_v38 = vpack.c.bf16 %v896_v43, %v880_v42  ;;  %v977_v29 = vpack.c.bf16 %v897_v62, %v881_v30 }
 0x183   : > { %v2693_v52 = vpop.f32.mrf.mxu2  ;;  %v2695_v53 = vpop.f32.mrf.mxu3 }
 0x184   : > { %v712_v19 = vpop.f32.mrf.mxu0  ;;  %v741_v14 = vpop.f32.mrf.mxu1  ;;  %v898_v13 = vmax.f32 %v2693_v52, 0.0  ;;  %v899_v16 = vmax.f32 %v2695_v53, 0.0  ;;  %v944_v52 = vpack.c.bf16 %v832_v20, %v816_v1  ;;  %v945_v53 = vpack.c.bf16 %v833_v10, %v817_v12 }
 0x185   : > { %v912_v31 = vmax.f32 %v712_v19, 0.0  ;;  %v913_v2 = vmax.f32 %v741_v14, 0.0  ;;  %v851_v14 = vmax.f32 %v2671_v34, 0.0 }
 0x186   : > { %v978_v22 = vpack.c.bf16 %v898_v13, %v882_v32  ;;  %v979_v23 = vpack.c.bf16 %v899_v16, %v883_v33 }
 0x187   : > { %2101 = vmatmul.msk.bf16.gmra.mxu0 %vm1024_vm2, %v2603_v5  ;;  %2105 = vmatmul.msk.bf16.gmra.mxu1 %vm1024_vm2, %v2603_v5 }
 0x188   : > { %2109 = vmatmul.msk.bf16.gmra.mxu2 %vm1024_vm2, %v2603_v5  ;;  %2113 = vmatmul.msk.bf16.gmra.mxu3 %vm1024_vm2, %v2603_v5 }
 0x18b   : > { %v770_v35 = vpop.f32.mrf.mxu2  ;;  %v799_v37 = vpop.f32.mrf.mxu3 }
 0x18c   : > { %v714_v36 = vpop.f32.mrf.mxu0  ;;  %v743_v39 = vpop.f32.mrf.mxu1  ;;  %v914_v45 = vmax.f32 %v770_v35, 0.0  ;;  %v915_v4 = vmax.f32 %v799_v37, 0.0  ;;  %v818_v35 = vmax.f32 %v2639_v58, 0.0  ;;  %v819_v37 = vmax.f32 %v2641_v59, 0.0 }
 0x18d   : > { %v928_v40 = vmax.f32 %v714_v36, 0.0  ;;  %v929_v41 = vmax.f32 %v743_v39, 0.0 }
 0x18e   : > { %v946_v36 = vpack.c.bf16 %v834_v11, %v818_v35  ;;  %v947_v3 = vpack.c.bf16 %v835_v21, %v819_v37 }
 0x18f   : > { %v992_v7 = vpack.c.bf16 %v928_v40, %v912_v31  ;;  %v993_v46 = vpack.c.bf16 %v929_v41, %v913_v2  ;;  %v962_v31 = vpack.c.bf16 %v866_v8, %v850_v26  ;;  %v963_v2 = vpack.c.bf16 %v867_v56, %v851_v14 }
 0x191   : > { %1389 = vmatpush.bf16.msrb.mxu0 %v992_v7  ;;  %1418 = vmatpush.bf16.msrb.mxu1 %v993_v46 }
 0x193   : > { %v772_v54 = vpop.f32.mrf.mxu2  ;;  %v801_v55 = vpop.f32.mrf.mxu3 }
 0x194   : > { %v930_v57 = vmax.f32 %v772_v54, 0.0  ;;  %v931_v9 = vmax.f32 %v801_v55, 0.0  ;;  %v2709_v49 = vpop.f32.mrf.mxu0  ;;  %v2711_v50 = vpop.f32.mrf.mxu1 }
 0x195   : > { %1390 = vmatpush.bf16.msrb.mxu0 %v976_v38  ;;  %1419 = vmatpush.bf16.msrb.mxu1 %v977_v29  ;;  %v1501_v35 = vmax.f32 %v2709_v49, 0.0  ;;  %v1502_v37 = vmax.f32 %v2711_v50, 0.0 }
 0x196   : > { %v994_v60 = vpack.c.bf16 %v930_v57, %v914_v45  ;;  %v995_v61 = vpack.c.bf16 %v931_v9, %v915_v4 }
 0x197   : > { %2114 = vmatmul.msk.bf16.vlgmr.msra.gmra.mxu0 %vm1024_vm2, %v2508_v0  ;;  %2118 = vmatmul.msk.bf16.vlgmr.msra.gmra.mxu1 %vm1024_vm2, %v2508_v0 }
 0x198   : > { %2122 = vmatmul.msk.bf16.vlgmr.msra.gmra.mxu2 %vm1024_vm2, %v2508_v0  ;;  %2126 = vmatmul.msk.bf16.vlgmr.msra.gmra.mxu3 %vm1024_vm2, %v2508_v0 }
 0x199   : > { %1447 = vmatpush.bf16.msrb.mxu2 %v994_v60  ;;  %1476 = vmatpush.bf16.msrb.mxu3 %v995_v61 }
 0x19a   : > { %1391 = vmatpush.bf16.msrb.mxu0 %v960_v44  ;;  %1420 = vmatpush.bf16.msrb.mxu1 %v961_v63 }
 0x19b   : > { %v2731_v6 = vpop.f32.mrf.mxu2  ;;  %v2733_v28 = vpop.f32.mrf.mxu3 }
 0x19c   : > { %v2735_v19 = vpop.f32.mrf.mxu0  ;;  %v2737_v25 = vpop.f32.mrf.mxu1 }
 0x19d   : > { %1448 = vmatpush.bf16.msrb.mxu2 %v978_v22  ;;  %1477 = vmatpush.bf16.msrb.mxu3 %v979_v23 }
 0x19e   : > { %1392 = vmatpush.bf16.msrb.mxu0 %v944_v52  ;;  %1421 = vmatpush.bf16.msrb.mxu1 %v945_v53 }
 0x1a1   : > { %1449 = vmatpush.bf16.msrb.mxu2 %v962_v31  ;;  %1478 = vmatpush.bf16.msrb.mxu3 %v963_v2 }
 0x1a3   : > { %v2745_v39 = vpop.f32.mrf.mxu2  ;;  %v2747_v34 = vpop.f32.mrf.mxu3 }
 0x1a4   : > { %v2749_v40 = vpop.f32.mrf.mxu0  ;;  %v2751_v41 = vpop.f32.mrf.mxu1 }
 0x1a5   : > { %1450 = vmatpush.bf16.msrb.mxu2 %v946_v36  ;;  %1479 = vmatpush.bf16.msrb.mxu3 %v947_v3  ;;  %v1533_v44 = vmax.f32 %v2749_v40, 0.0  ;;  %v1534_v63 = vmax.f32 %v2751_v41, 0.0  ;;  %v1517_v40 = vmax.f32 %v2735_v19, 0.0  ;;  %v1518_v41 = vmax.f32 %v2737_v25, 0.0 }
 0x1a7   : > { %2115 = vmatmul.msk.bf16.gmra.mxu0 %vm1024_vm2, %v2553_v27  ;;  %2119 = vmatmul.msk.bf16.gmra.mxu1 %vm1024_vm2, %v2553_v27 }
 0x1a8   : > { %2123 = vmatmul.msk.bf16.gmra.mxu2 %vm1024_vm2, %v2553_v27  ;;  %2127 = vmatmul.msk.bf16.gmra.mxu3 %vm1024_vm2, %v2553_v27 }
 0x1ab   : > { %v2761_v58 = vpop.f32.mrf.mxu2  ;;  %v2763_v59 = vpop.f32.mrf.mxu3 }
 0x1ac   : > { %v2765_v18 = vpop.f32.mrf.mxu0  ;;  %v2767_v17 = vpop.f32.mrf.mxu1 }
 0x1ad   : > { %v1549_v32 = vmax.f32 %v2765_v18, 0.0  ;;  %v1550_v33 = vmax.f32 %v2767_v17, 0.0 }
 0x1af   : > { %v1645_v18 = vpack.c.bf16 %v1549_v32, %v1533_v44  ;;  %v1646_v17 = vpack.c.bf16 %v1550_v33, %v1534_v63 }
 0x1b3   : > { %v2769_v42 = vpop.f32.mrf.mxu2  ;;  %v2771_v30 = vpop.f32.mrf.mxu3 }
 0x1b4   : > { %v1056_v43 = vpop.f32.mrf.mxu0  ;;  %v1085_v62 = vpop.f32.mrf.mxu1  ;;  %v1551_v19 = vmax.f32 %v2769_v42, 0.0  ;;  %v1552_v25 = vmax.f32 %v2771_v30, 0.0  ;;  %v1519_v42 = vmax.f32 %v2745_v39, 0.0  ;;  %v1520_v30 = vmax.f32 %v2747_v34, 0.0 }
 0x1b5   : > { %v1565_v1 = vmax.f32 %v1056_v43, 0.0  ;;  %v1566_v12 = vmax.f32 %v1085_v62, 0.0 }
 0x1b7   : > { %2116 = vmatmul.msk.bf16.gmra.mxu0 %vm1024_vm2, %v2582_v51  ;;  %2120 = vmatmul.msk.bf16.gmra.mxu1 %vm1024_vm2, %v2582_v51 }
 0x1b8   : > { %2124 = vmatmul.msk.bf16.gmra.mxu2 %vm1024_vm2, %v2582_v51  ;;  %2128 = vmatmul.msk.bf16.gmra.mxu3 %vm1024_vm2, %v2582_v51 }
 0x1bb   : > { %v2781_v7 = vpop.f32.mrf.mxu2  ;;  %v2783_v46 = vpop.f32.mrf.mxu3 }
 0x1bc   : > { %v1058_v47 = vpop.f32.mrf.mxu0  ;;  %v1087_v48 = vpop.f32.mrf.mxu1  ;;  %v1567_v49 = vmax.f32 %v2781_v7, 0.0  ;;  %v1568_v50 = vmax.f32 %v2783_v46, 0.0  ;;  %v1535_v46 = vmax.f32 %v2761_v58, 0.0 }
 0x1bd   : > { %v1581_v13 = vmax.f32 %v1058_v47, 0.0  ;;  %v1582_v16 = vmax.f32 %v1087_v48, 0.0 }
 0x1bf   : > { %v1661_v8 = vpack.c.bf16 %v1581_v13, %v1565_v1  ;;  %v1662_v56 = vpack.c.bf16 %v1582_v16, %v1566_v12 }
 0x1c3   : > { %v2785_v24 = vpop.f32.mrf.mxu2  ;;  %v2787_v15 = vpop.f32.mrf.mxu3 }
 0x1c4   : > { %v1061_v38 = vpop.f32.mrf.mxu0  ;;  %v1090_v29 = vpop.f32.mrf.mxu1  ;;  %v1583_v36 = vmax.f32 %v2785_v24, 0.0  ;;  %v1584_v3 = vmax.f32 %v2787_v15, 0.0  ;;  %v1629_v24 = vpack.c.bf16 %v1517_v40, %v1501_v35 }
 0x1c5   : > { %v1597_v54 = vmax.f32 %v1061_v38, 0.0  ;;  %v1598_v55 = vmax.f32 %v1090_v29, 0.0  ;;  %v1536_v38 = vmax.f32 %v2763_v59, 0.0  ;;  %v1647_v29 = vpack.c.bf16 %v1551_v19, %v1535_v46 }
 0x1c6   : > { %v1663_v43 = vpack.c.bf16 %v1583_v36, %v1567_v49  ;;  %v1664_v62 = vpack.c.bf16 %v1584_v3, %v1568_v50 }
 0x1c7   : > { %2117 = vmatmul.msk.bf16.gmra.mxu0 %vm1024_vm2, %v2603_v5  ;;  %2121 = vmatmul.msk.bf16.gmra.mxu1 %vm1024_vm2, %v2603_v5 }
 0x1c8   : > { %2125 = vmatmul.msk.bf16.gmra.mxu2 %vm1024_vm2, %v2603_v5  ;;  %2129 = vmatmul.msk.bf16.gmra.mxu3 %vm1024_vm2, %v2603_v5 }
 0x1cb   : > { %v1119_v45 = vpop.f32.mrf.mxu2  ;;  %v1148_v4 = vpop.f32.mrf.mxu3 }
 0x1cc   : > { %v1063_v57 = vpop.f32.mrf.mxu0  ;;  %v1092_v9 = vpop.f32.mrf.mxu1  ;;  %v1599_v52 = vmax.f32 %v1119_v45, 0.0  ;;  %v1600_v53 = vmax.f32 %v1148_v4, 0.0  ;;  %v1504_v45 = vmax.f32 %v2733_v28, 0.0 }
 0x1cd   : > { %v1613_v60 = vmax.f32 %v1063_v57, 0.0  ;;  %v1614_v61 = vmax.f32 %v1092_v9, 0.0 }
 0x1ce   : > { %v1632_v58 = vpack.c.bf16 %v1520_v30, %v1504_v45 }
 0x1cf   : > { %v1677_v20 = vpack.c.bf16 %v1613_v60, %v1597_v54  ;;  %v1678_v10 = vpack.c.bf16 %v1614_v61, %v1598_v55  ;;  %v1648_v54 = vpack.c.bf16 %v1552_v25, %v1536_v38  ;;  %v1503_v55 = vmax.f32 %v2731_v6, 0.0 }
 0x1d1   : > { %1701 = vmatpush.bf16.msra.mxu0 %v1677_v20  ;;  %1714 = vmatpush.bf16.msra.mxu1 %v1678_v10  ;;  %v1631_v4 = vpack.c.bf16 %v1519_v42, %v1503_v55 }
 0x1d3   : > { %v1121_v22 = vpop.f32.mrf.mxu2  ;;  %v1150_v23 = vpop.f32.mrf.mxu3 }
 0x1d4   : > { %v1615_v26 = vmax.f32 %v1121_v22, 0.0  ;;  %v1616_v14 = vmax.f32 %v1150_v23, 0.0  ;;  %v2801_v11 = vpop.f32.mrf.mxu0  ;;  %v2803_v21 = vpop.f32.mrf.mxu1 }
 0x1d5   : > { %1702 = vmatpush.bf16.msra.mxu0 %v1661_v8  ;;  %1715 = vmatpush.bf16.msra.mxu1 %v1662_v56  ;;  %v1505_v46 = vmax.f32 %v2801_v11, 0.0  ;;  %v1506_v38 = vmax.f32 %v2803_v21, 0.0 }
 0x1d6   : > { %v1679_v31 = vpack.c.bf16 %v1615_v26, %v1599_v52  ;;  %v1680_v2 = vpack.c.bf16 %v1616_v14, %v1600_v53 }
 0x1d7   : > { %2130 = vmatmul.msk.bf16.vlgmr.msrb.gmra.mxu0 %vm1024_vm2, %v2508_v0  ;;  %2134 = vmatmul.msk.bf16.vlgmr.msrb.gmra.mxu1 %vm1024_vm2, %v2508_v0 }
 0x1d8   : > { %2138 = vmatmul.msk.bf16.vlgmr.msrb.gmra.mxu2 %vm1024_vm2, %v2508_v0  ;;  %2142 = vmatmul.msk.bf16.vlgmr.msrb.gmra.mxu3 %vm1024_vm2, %v2508_v0  ;;  %v1630_v0 = vpack.c.bf16 %v1518_v41, %v1502_v37 }
 0x1d9   : > { %1727 = vmatpush.bf16.msra.mxu2 %v1679_v31  ;;  %1740 = vmatpush.bf16.msra.mxu3 %v1680_v2 }
 0x1da   : > { %1703 = vmatpush.bf16.msra.mxu0 %v1645_v18  ;;  %1716 = vmatpush.bf16.msra.mxu1 %v1646_v17 }
 0x1db   : > { %v2823_v47 = vpop.f32.mrf.mxu2  ;;  %v2825_v48 = vpop.f32.mrf.mxu3 }
 0x1dc   : > { %v2827_v15 = vpop.f32.mrf.mxu0  ;;  %v2829_v7 = vpop.f32.mrf.mxu1 }
 0x1dd   : > { %1728 = vmatpush.bf16.msra.mxu2 %v1663_v43  ;;  %1741 = vmatpush.bf16.msra.mxu3 %v1664_v62  ;;  %v1521_v55 = vmax.f32 %v2827_v15, 0.0  ;;  %v1522_v45 = vmax.f32 %v2829_v7, 0.0 }
 0x1de   : > { %1704 = vmatpush.bf16.msra.mxu0 %v1629_v24  ;;  %1717 = vmatpush.bf16.msra.mxu1 %v1630_v0 }
 0x1df   : > { %v1634_v15 = vpack.c.bf16 %v1522_v45, %v1506_v38 }
 0x1e1   : > { %1729 = vmatpush.bf16.msra.mxu2 %v1647_v29  ;;  %1742 = vmatpush.bf16.msra.mxu3 %v1648_v54 }
 0x1e3   : > { %v2837_v57 = vpop.f32.mrf.mxu2  ;;  %v2839_v59 = vpop.f32.mrf.mxu3 }
 0x1e4   : > { %v2841_v9 = vpop.f32.mrf.mxu0  ;;  %v2843_v60 = vpop.f32.mrf.mxu1 }
 0x1e5   : > { %1730 = vmatpush.bf16.msra.mxu2 %v1631_v4  ;;  %1743 = vmatpush.bf16.msra.mxu3 %v1632_v58  ;;  %v1537_v3 = vmax.f32 %v2841_v9, 0.0 }
 0x1e7   : > { %2131 = vmatmul.msk.bf16.gmra.mxu0 %vm1024_vm2, %v2553_v27  ;;  %2135 = vmatmul.msk.bf16.gmra.mxu1 %vm1024_vm2, %v2553_v27 }
 0x1e8   : > { %2139 = vmatmul.msk.bf16.gmra.mxu2 %vm1024_vm2, %v2553_v27  ;;  %2143 = vmatmul.msk.bf16.gmra.mxu3 %vm1024_vm2, %v2553_v27 }
 0x1eb   : > { %v2853_v6 = vpop.f32.mrf.mxu2  ;;  %v2855_v28 = vpop.f32.mrf.mxu3 }
 0x1ec   : > { %v2857_v39 = vpop.f32.mrf.mxu0  ;;  %v2859_v34 = vpop.f32.mrf.mxu1 }
 0x1ed   : > { %v1553_v40 = vmax.f32 %v2857_v39, 0.0  ;;  %v1554_v41 = vmax.f32 %v2859_v34, 0.0 }
 0x1ef   : > { %v1649_v4 = vpack.c.bf16 %v1553_v40, %v1537_v3 }
 0x1f3   : > { %v2861_v61 = vpop.f32.mrf.mxu2  ;;  %v2863_v1 = vpop.f32.mrf.mxu3 }
 0x1f4   : > { %v1172_v12 = vpop.f32.mrf.mxu0  ;;  %v1201_v13 = vpop.f32.mrf.mxu1  ;;  %v1555_v11 = vmax.f32 %v2861_v61, 0.0  ;;  %v1556_v21 = vmax.f32 %v2863_v1, 0.0  ;;  %v1523_v61 = vmax.f32 %v2837_v57, 0.0  ;;  %v1524_v1 = vmax.f32 %v2839_v59, 0.0 }
 0x1f5   : > { %v1569_v14 = vmax.f32 %v1172_v12, 0.0  ;;  %v1570_v31 = vmax.f32 %v1201_v13, 0.0  ;;  %v1633_v12 = vpack.c.bf16 %v1521_v55, %v1505_v46 }
 0x1f7   : > { %2132 = vmatmul.msk.bf16.gmra.mxu0 %vm1024_vm2, %v2582_v51  ;;  %2136 = vmatmul.msk.bf16.gmra.mxu1 %vm1024_vm2, %v2582_v51 }
 0x1f8   : > { %2140 = vmatmul.msk.bf16.gmra.mxu2 %vm1024_vm2, %v2582_v51  ;;  %2144 = vmatmul.msk.bf16.gmra.mxu3 %vm1024_vm2, %v2582_v51 }
 0x1fb   : > { %v2873_v27 = vpop.f32.mrf.mxu2  ;;  %v2875_v16 = vpop.f32.mrf.mxu3 }
 0x1fc   : > { %v1174_v20 = vpop.f32.mrf.mxu0  ;;  %v1203_v10 = vpop.f32.mrf.mxu1  ;;  %v1571_v9 = vmax.f32 %v2873_v27, 0.0  ;;  %v1539_v27 = vmax.f32 %v2853_v6, 0.0  ;;  %v1508_v6 = vmax.f32 %v2825_v48, 0.0 }
 0x1fd   : > { %v1585_v2 = vmax.f32 %v1174_v20, 0.0  ;;  %v1586_v35 = vmax.f32 %v1203_v10, 0.0 }
 0x1ff   : > { %v1665_v18 = vpack.c.bf16 %v1585_v2, %v1569_v14  ;;  %v1666_v17 = vpack.c.bf16 %v1586_v35, %v1570_v31 }
 0x203   : > { %v1232_v44 = vpop.f32.mrf.mxu2  ;;  %v1261_v63 = vpop.f32.mrf.mxu3 }
 0x204   : > { %v1177_v32 = vpop.f32.mrf.mxu0  ;;  %v1206_v33 = vpop.f32.mrf.mxu1  ;;  %v1587_v42 = vmax.f32 %v1232_v44, 0.0  ;;  %v1588_v30 = vmax.f32 %v1261_v63, 0.0  ;;  %v1651_v44 = vpack.c.bf16 %v1555_v11, %v1539_v27 }
 0x205   : > { %v1601_v51 = vmax.f32 %v1177_v32, 0.0  ;;  %v1602_v8 = vmax.f32 %v1206_v33, 0.0  ;;  %v1507_v32 = vmax.f32 %v2823_v47, 0.0  ;;  %v1636_v33 = vpack.c.bf16 %v1524_v1, %v1508_v6 }
 0x206   : > { %v1667_v39 = vpack.c.bf16 %v1587_v42, %v1571_v9 }
 0x207   : > { %2133 = vmatmul.msk.bf16.gmra.mxu0 %vm1024_vm2, %v2603_v5  ;;  %2137 = vmatmul.msk.bf16.gmra.mxu1 %vm1024_vm2, %v2603_v5 }
 0x208   : > { %2141 = vmatmul.msk.bf16.gmra.mxu2 %vm1024_vm2, %v2603_v5  ;;  %2145 = vmatmul.msk.bf16.gmra.mxu3 %vm1024_vm2, %v2603_v5  ;;  %v1538_v5 = vmax.f32 %v2843_v60, 0.0  ;;  %v1572_v60 = vmax.f32 %v2875_v16, 0.0  ;;  %v1540_v16 = vmax.f32 %v2855_v28, 0.0  ;;  %v1635_v28 = vpack.c.bf16 %v1523_v61, %v1507_v32 }
 0x20a   : > { %v1650_v58 = vpack.c.bf16 %v1554_v41, %v1538_v5  ;;  %v1668_v34 = vpack.c.bf16 %v1588_v30, %v1572_v60  ;;  %v1652_v63 = vpack.c.bf16 %v1556_v21, %v1540_v16 }
 0x20b   : > { %v1235_v56 = vpop.f32.mrf.mxu2  ;;  %v1264_v22 = vpop.f32.mrf.mxu3 }
 0x20c   : > { %v1179_v23 = vpop.f32.mrf.mxu0  ;;  %v1208_v52 = vpop.f32.mrf.mxu1  ;;  %v1603_v19 = vmax.f32 %v1235_v56, 0.0  ;;  %v1604_v25 = vmax.f32 %v1264_v22, 0.0 }
 0x20d   : > { %v1617_v53 = vmax.f32 %v1179_v23, 0.0  ;;  %v1618_v26 = vmax.f32 %v1208_v52, 0.0  ;;  %v2934_v23 = vld [vmem:[%s3058_s3] sm:$0xf] }
 0x20f   : > { %v1681_v37 = vpack.c.bf16 %v1617_v53, %v1601_v51  ;;  %v1682_v36 = vpack.c.bf16 %v1618_v26, %v1602_v8 }
 0x211   : > { %1753 = vmatpush.bf16.msrb.mxu0 %v1681_v37  ;;  %1766 = vmatpush.bf16.msrb.mxu1 %v1682_v36 }
 0x213   : > { %v1237_v49 = vpop.f32.mrf.mxu2  ;;  %v1266_v50 = vpop.f32.mrf.mxu3 }
 0x214   : > { %v1619_v43 = vmax.f32 %v1237_v49, 0.0  ;;  %v1620_v62 = vmax.f32 %v1266_v50, 0.0  ;;  %v2889_v24 = vpop.f32.mrf.mxu0  ;;  %v2891_v0 = vpop.f32.mrf.mxu1 }
 0x215   : > { %1754 = vmatpush.bf16.msrb.mxu0 %v1665_v18  ;;  %1767 = vmatpush.bf16.msrb.mxu1 %v1666_v17  ;;  %v1509_v16 = vmax.f32 %v2889_v24, 0.0  ;;  %v1510_v61 = vmax.f32 %v2891_v0, 0.0 }
 0x216   : > { %v1683_v29 = vpack.c.bf16 %v1619_v43, %v1603_v19  ;;  %v1684_v54 = vpack.c.bf16 %v1620_v62, %v1604_v25 }
 0x217   : > { %2146 = vmatmul.msk.bf16.vlgmr.msra.gmra.mxu0 %vm1024_vm2, %v2934_v23  ;;  %2147 = vmatmul.msk.bf16.vlgmr.msra.gmra.mxu1 %vm1024_vm2, %v2934_v23 }
 0x218   : > { %1779 = vmatpush.bf16.msrb.mxu2 %v1683_v29  ;;  %1792 = vmatpush.bf16.msrb.mxu3 %v1684_v54 }
 0x219   : > { %1755 = vmatpush.bf16.msrb.mxu0 %v1649_v4  ;;  %1768 = vmatpush.bf16.msrb.mxu1 %v1650_v58 }
 0x21a   : > { %2148 = vmatmul.msk.bf16.vlgmr.msra.gmra.mxu2 %vm1024_vm2, %v2934_v23  ;;  %2149 = vmatmul.msk.bf16.vlgmr.msra.gmra.mxu3 %vm1024_vm2, %v2934_v23 }
 0x21b   : > { %v2901_v13 = vpop.f32.mrf.mxu2  ;;  %v2903_v7 = vpop.f32.mrf.mxu3 }
 0x21c   : > { %1780 = vmatpush.bf16.msrb.mxu2 %v1667_v39  ;;  %1793 = vmatpush.bf16.msrb.mxu3 %v1668_v34  ;;  %v2907_v20 = vpop.f32.mrf.mxu0  ;;  %v2909_v10 = vpop.f32.mrf.mxu1 }
 0x21d   : > { %1756 = vmatpush.bf16.msrb.mxu0 %v1633_v12  ;;  %1769 = vmatpush.bf16.msrb.mxu1 %v1634_v15  ;;  %v1525_v6 = vmax.f32 %v2907_v20, 0.0 }
 0x220   : > { %1781 = vmatpush.bf16.msrb.mxu2 %v1651_v44  ;;  %1794 = vmatpush.bf16.msrb.mxu3 %v1652_v63 }
 0x223   : > { %v2915_v51 = vpop.f32.mrf.mxu2  ;;  %v2917_v8 = vpop.f32.mrf.mxu3 }
 0x224   : > { %1782 = vmatpush.bf16.msrb.mxu2 %v1635_v28  ;;  %1795 = vmatpush.bf16.msrb.mxu3 %v1636_v33  ;;  %v2919_v56 = vpop.f32.mrf.mxu0  ;;  %v2921_v57 = vpop.f32.mrf.mxu1  ;;  %v1526_v28 = vmax.f32 %v2909_v10, 0.0 }
 0x225   : > { %v1541_v54 = vmax.f32 %v2919_v56, 0.0  ;;  %v1542_v55 = vmax.f32 %v2921_v57, 0.0 }
 0x226   : > { %v1638_v20 = vpack.c.bf16 %v1526_v28, %v1510_v61 }
 0x227   : > { %2150 = vmatmul.msk.bf16.vlgmr.msrb.gmra.mxu0 %vm1024_vm2, %v2934_v23  ;;  %2151 = vmatmul.msk.bf16.vlgmr.msrb.gmra.mxu1 %vm1024_vm2, %v2934_v23 }
 0x22a   : > { %2152 = vmatmul.msk.bf16.vlgmr.msrb.gmra.mxu2 %vm1024_vm2, %v2934_v23  ;;  %2153 = vmatmul.msk.bf16.vlgmr.msrb.gmra.mxu3 %vm1024_vm2, %v2934_v23 }
 0x22b   : > { %v2923_v59 = vpop.f32.mrf.mxu2  ;;  %v2925_v22 = vpop.f32.mrf.mxu3 }
 0x22c   : > { %v2927_v47 = vpop.f32.mrf.mxu0  ;;  %v2929_v48 = vpop.f32.mrf.mxu1 }
 0x22d   : > { %v1557_v45 = vmax.f32 %v2927_v47, 0.0  ;;  %v1558_v4 = vmax.f32 %v2929_v48, 0.0 }
 0x22f   : > { %v1653_v33 = vpack.c.bf16 %v1557_v45, %v1541_v54  ;;  %v1654_v56 = vpack.c.bf16 %v1558_v4, %v1542_v55 }
 0x233   : > { %v2944_v52 = vpop.f32.mrf.mxu2  ;;  %v2946_v53 = vpop.f32.mrf.mxu3 }
 0x234   : > { %v1288_v26 = vpop.f32.mrf.mxu0  ;;  %v1317_v14 = vpop.f32.mrf.mxu1  ;;  %v1559_v24 = vmax.f32 %v2944_v52, 0.0  ;;  %v1560_v0 = vmax.f32 %v2946_v53, 0.0  ;;  %v1527_v52 = vmax.f32 %v2915_v51, 0.0  ;;  %v1528_v53 = vmax.f32 %v2917_v8, 0.0 }
 0x235   : > { %v1573_v62 = vmax.f32 %v1288_v26, 0.0  ;;  %v1574_v46 = vmax.f32 %v1317_v14, 0.0  ;;  %v1637_v14 = vpack.c.bf16 %v1525_v6, %v1509_v16 }
 0x23b   : > { %v2948_v31 = vpop.f32.mrf.mxu2  ;;  %v2950_v2 = vpop.f32.mrf.mxu3 }
 0x23c   : > { %v1290_v35 = vpop.f32.mrf.mxu0  ;;  %v1319_v37 = vpop.f32.mrf.mxu1  ;;  %v1575_v57 = vmax.f32 %v2948_v31, 0.0  ;;  %v1576_v47 = vmax.f32 %v2950_v2, 0.0  ;;  %v1543_v31 = vmax.f32 %v2923_v59, 0.0  ;;  %v1544_v2 = vmax.f32 %v2925_v22, 0.0 }
 0x23d   : > { %v1589_v38 = vmax.f32 %v1290_v35, 0.0  ;;  %v1590_v42 = vmax.f32 %v1319_v37, 0.0  ;;  %v1512_v59 = vmax.f32 %v2903_v7, 0.0 }
 0x23f   : > { %v1669_v58 = vpack.c.bf16 %v1589_v38, %v1573_v62  ;;  %v1670_v9 = vpack.c.bf16 %v1590_v42, %v1574_v46 }
 0x243   : > { %v1348_v36 = vpop.f32.mrf.mxu2  ;;  %v1377_v3 = vpop.f32.mrf.mxu3 }
 0x244   : > { %v1293_v5 = vpop.f32.mrf.mxu0  ;;  %v1322_v40 = vpop.f32.mrf.mxu1  ;;  %v1591_v1 = vmax.f32 %v1348_v36, 0.0  ;;  %v1592_v44 = vmax.f32 %v1377_v3, 0.0  ;;  %v1655_v3 = vpack.c.bf16 %v1559_v24, %v1543_v31 }
 0x245   : > { %v1605_v41 = vmax.f32 %v1293_v5, 0.0  ;;  %v1606_v18 = vmax.f32 %v1322_v40, 0.0  ;;  %v1656_v5 = vpack.c.bf16 %v1560_v0, %v1544_v2  ;;  %v1511_v40 = vmax.f32 %v2901_v13, 0.0 }
 0x246   : > { %v1671_v48 = vpack.c.bf16 %v1591_v1, %v1575_v57  ;;  %v1672_v26 = vpack.c.bf16 %v1592_v44, %v1576_v47 }
 0x247   : > { %v1639_v22 = vpack.c.bf16 %v1527_v52, %v1511_v40 }
 0x24b   : > { %v1351_v17 = vpop.f32.mrf.mxu2  ;;  %v1380_v49 = vpop.f32.mrf.mxu3 }
 0x24c   : > { %v1295_v50 = vpop.f32.mrf.mxu0  ;;  %v1324_v19 = vpop.f32.mrf.mxu1  ;;  %v1607_v21 = vmax.f32 %v1351_v17, 0.0  ;;  %v1608_v39 = vmax.f32 %v1380_v49, 0.0 }
 0x24d   : > { %v1621_v25 = vmax.f32 %v1295_v50, 0.0  ;;  %v1622_v43 = vmax.f32 %v1324_v19, 0.0 }
 0x24f   : > { %v1685_v30 = vpack.c.bf16 %v1621_v25, %v1605_v41  ;;  %v1686_v29 = vpack.c.bf16 %v1622_v43, %v1606_v18  ;;  %v1640_v41 = vpack.c.bf16 %v1528_v53, %v1512_v59 }
 0x251   : > { %1805 = vmatpush.bf16.msra.mxu0 %v1685_v30  ;;  %1818 = vmatpush.bf16.msra.mxu1 %v1686_v29 }
 0x253   : > { %v1353_v60 = vpop.f32.mrf.mxu2  ;;  %v1382_v11 = vpop.f32.mrf.mxu3 }
 0x254   : > { %v1623_v34 = vmax.f32 %v1353_v60, 0.0  ;;  %v1624_v12 = vmax.f32 %v1382_v11, 0.0  ;;  %v2964_v15 = vpop.f32.mrf.mxu0  ;;  %v2966_v27 = vpop.f32.mrf.mxu1 }
 0x255   : > { %1806 = vmatpush.bf16.msra.mxu0 %v1669_v58  ;;  %1819 = vmatpush.bf16.msra.mxu1 %v1670_v9  ;;  %v1514_v31 = vmax.f32 %v2966_v27, 0.0 }
 0x256   : > { %v1687_v63 = vpack.c.bf16 %v1623_v34, %v1607_v21  ;;  %v1688_v32 = vpack.c.bf16 %v1624_v12, %v1608_v39 }
 0x258   : > { %1831 = vmatpush.bf16.msra.mxu2 %v1687_v63  ;;  %1844 = vmatpush.bf16.msra.mxu3 %v1688_v32 }
 0x259   : > { %1807 = vmatpush.bf16.msra.mxu0 %v1653_v33  ;;  %1820 = vmatpush.bf16.msra.mxu1 %v1654_v56 }
 0x25b   : > { %v2976_v35 = vpop.f32.mrf.mxu2  ;;  %v2978_v10 = vpop.f32.mrf.mxu3 }
 0x25c   : > { %1832 = vmatpush.bf16.msra.mxu2 %v1671_v48  ;;  %1845 = vmatpush.bf16.msra.mxu3 %v1672_v26  ;;  %v2982_v37 = vpop.f32.mrf.mxu0  ;;  %v2984_v36 = vpop.f32.mrf.mxu1 }
 0x25d   : > { %1808 = vmatpush.bf16.msra.mxu0 %v1637_v14  ;;  %1821 = vmatpush.bf16.msra.mxu1 %v1638_v20  ;;  %v1513_v20 = vmax.f32 %v2964_v15, 0.0  ;;  %v1530_v40 = vmax.f32 %v2984_v36, 0.0 }
 0x260   : > { %1833 = vmatpush.bf16.msra.mxu2 %v1655_v3  ;;  %1846 = vmatpush.bf16.msra.mxu3 %v1656_v5  ;;  %v1529_v5 = vmax.f32 %v2982_v37, 0.0 }
 0x261   : > { %2154 = vmatmul.msk.bf16.vlgmr.msra.gmra.mxu0 %vm1024_vm2, %v2934_v23  ;;  %2155 = vmatmul.msk.bf16.vlgmr.msra.gmra.mxu1 %vm1024_vm2, %v2934_v23 }
 0x263   : > { %v2994_v18 = vpop.f32.mrf.mxu2  ;;  %v2996_v51 = vpop.f32.mrf.mxu3 }
 0x264   : > { %1834 = vmatpush.bf16.msra.mxu2 %v1639_v22  ;;  %1847 = vmatpush.bf16.msra.mxu3 %v1640_v41  ;;  %v1399_v8 = vpop.f32.mrf.mxu0  ;;  %v1428_v13 = vpop.f32.mrf.mxu1 }
 0x265   : > { %v1545_v32 = vmax.f32 %v1399_v8, 0.0  ;;  %v1546_v6 = vmax.f32 %v1428_v13, 0.0 }
 0x267   : > { %2156 = vmatmul.msk.bf16.vlgmr.msra.gmra.mxu2 %vm1024_vm2, %v2934_v23  ;;  %2157 = vmatmul.msk.bf16.vlgmr.msra.gmra.mxu3 %vm1024_vm2, %v2934_v23 }
 0x26b   : > { %v3002_v7 = vpop.f32.mrf.mxu2  ;;  %v3004_v17 = vpop.f32.mrf.mxu3 }
 0x26c   : > { %v1401_v49 = vpop.f32.mrf.mxu0  ;;  %v1430_v50 = vpop.f32.mrf.mxu1  ;;  %v1547_v37 = vmax.f32 %v3002_v7, 0.0  ;;  %v1548_v36 = vmax.f32 %v3004_v17, 0.0 }
 0x26d   : > { %v1561_v28 = vmax.f32 %v1401_v49, 0.0  ;;  %v1562_v33 = vmax.f32 %v1430_v50, 0.0  ;;  %v1641_v50 = vpack.c.bf16 %v1529_v5, %v1513_v20 }
 0x26f   : > { %v1657_v59 = vpack.c.bf16 %v1561_v28, %v1545_v32  ;;  %v1658_v22 = vpack.c.bf16 %v1562_v33, %v1546_v6 }
 0x273   : > { %v3006_v19 = vpop.f32.mrf.mxu2  ;;  %v3008_v25 = vpop.f32.mrf.mxu3 }
 0x274   : > { %v1404_v43 = vpop.f32.mrf.mxu0  ;;  %v1433_v62 = vpop.f32.mrf.mxu1  ;;  %v1563_v15 = vmax.f32 %v3006_v19, 0.0  ;;  %v1564_v27 = vmax.f32 %v3008_v25, 0.0  ;;  %v1515_v25 = vmax.f32 %v2976_v35, 0.0 }
 0x275   : > { %v1577_v12 = vmax.f32 %v1404_v43, 0.0  ;;  %v1578_v16 = vmax.f32 %v1433_v62, 0.0  ;;  %v1642_v43 = vpack.c.bf16 %v1530_v40, %v1514_v31  ;;  %v1531_v62 = vmax.f32 %v2994_v18, 0.0 }
 0x276   : > { %v1659_v19 = vpack.c.bf16 %v1563_v15, %v1547_v37 }
 0x277   : > { %v1643_v7 = vpack.c.bf16 %v1531_v62, %v1515_v25 }
 0x27b   : > { %v1462_v46 = vpop.f32.mrf.mxu2  ;;  %v1491_v38 = vpop.f32.mrf.mxu3 }
 0x27c   : > { %v1406_v42 = vpop.f32.mrf.mxu0  ;;  %v1435_v30 = vpop.f32.mrf.mxu1  ;;  %v1579_v41 = vmax.f32 %v1462_v46, 0.0  ;;  %v1580_v8 = vmax.f32 %v1491_v38, 0.0  ;;  %v1532_v46 = vmax.f32 %v2996_v51, 0.0  ;;  %v1660_v38 = vpack.c.bf16 %v1564_v27, %v1548_v36 }
 0x27d   : > { %v1593_v61 = vmax.f32 %v1406_v42, 0.0  ;;  %v1594_v1 = vmax.f32 %v1435_v30, 0.0  ;;  %v1516_v42 = vmax.f32 %v2978_v10, 0.0 }
 0x27f   : > { %v1673_v56 = vpack.c.bf16 %v1593_v61, %v1577_v12  ;;  %v1674_v57 = vpack.c.bf16 %v1594_v1, %v1578_v16  ;;  %v1644_v17 = vpack.c.bf16 %v1532_v46, %v1516_v42 }
 0x283   : > { %v1464_v29 = vpop.f32.mrf.mxu2  ;;  %v1493_v54 = vpop.f32.mrf.mxu3 }
 0x284   : > { %v1409_v55 = vpop.f32.mrf.mxu0  ;;  %v1438_v45 = vpop.f32.mrf.mxu1  ;;  %v1595_v2 = vmax.f32 %v1464_v29, 0.0  ;;  %v1596_v52 = vmax.f32 %v1493_v54, 0.0 }
 0x285   : > { %v1609_v4 = vmax.f32 %v1409_v55, 0.0  ;;  %v1610_v58 = vmax.f32 %v1438_v45, 0.0 }
 0x286   : > { %v1675_v13 = vpack.c.bf16 %v1595_v2, %v1579_v41  ;;  %v1676_v49 = vpack.c.bf16 %v1596_v52, %v1580_v8 }
 0x28b   : > { %v1467_v9 = vpop.f32.mrf.mxu2  ;;  %v1496_v60 = vpop.f32.mrf.mxu3 }
 0x28c   : > { %v1411_v11 = vpop.f32.mrf.mxu0  ;;  %v1440_v21 = vpop.f32.mrf.mxu1  ;;  %v1611_v0 = vmax.f32 %v1467_v9, 0.0  ;;  %v1612_v48 = vmax.f32 %v1496_v60, 0.0 }
 0x28d   : > { %v1625_v39 = vmax.f32 %v1411_v11, 0.0  ;;  %v1626_v34 = vmax.f32 %v1440_v21, 0.0 }
 0x28f   : > { %v1689_v44 = vpack.c.bf16 %v1625_v39, %v1609_v4  ;;  %v1690_v63 = vpack.c.bf16 %v1626_v34, %v1610_v58 }
 0x291   : > { %1857 = vmatpush.bf16.msrb.mxu0 %v1689_v44  ;;  %1870 = vmatpush.bf16.msrb.mxu1 %v1690_v63 }
 0x293   : > { %v1469_v47 = vpop.f32.mrf.mxu2  ;;  %v1498_v24 = vpop.f32.mrf.mxu3 }
 0x294   : > { %v1627_v26 = vmax.f32 %v1469_v47, 0.0  ;;  %v1628_v14 = vmax.f32 %v1498_v24, 0.0  ;;  %v1706_v35 = vpop.f32.mrf.mxu0  ;;  %v1719_v10 = vpop.f32.mrf.mxu1 }
 0x295   : > { %1858 = vmatpush.bf16.msrb.mxu0 %v1673_v56  ;;  %1871 = vmatpush.bf16.msrb.mxu1 %v1674_v57  ;;  %1905 = vst [vmem:[%s3034_s19] sm:$0xff] %v1706_v35 }
 0x296   : > { %v1691_v53 = vpack.c.bf16 %v1627_v26, %v1611_v0  ;;  %v1692_v3 = vpack.c.bf16 %v1628_v14, %v1612_v48  ;;  %1906 = vst [vmem:[%s3034_s19 + $0x8] sm:$0xff] %v1719_v10 }
 0x298   : > { %1883 = vmatpush.bf16.msrb.mxu2 %v1691_v53  ;;  %1896 = vmatpush.bf16.msrb.mxu3 %v1692_v3 }
 0x299   : > { %1859 = vmatpush.bf16.msrb.mxu0 %v1657_v59  ;;  %1872 = vmatpush.bf16.msrb.mxu1 %v1658_v22 }
 0x29c   : > { %1884 = vmatpush.bf16.msrb.mxu2 %v1675_v13  ;;  %1897 = vmatpush.bf16.msrb.mxu3 %v1676_v49  ;;  %v1721_v30 = vpop.f32.mrf.mxu1 }
 0x29d   : > { %1860 = vmatpush.bf16.msrb.mxu0 %v1641_v50  ;;  %1873 = vmatpush.bf16.msrb.mxu1 %v1642_v43  ;;  %v1732_v18 = vpop.f32.mrf.mxu2  ;;  %v1745_v51 = vpop.f32.mrf.mxu3 }
 0x29e   : > { %1907 = vst [vmem:[%s3034_s19 + $0x10] sm:$0xff] %v1732_v18 }
 0x29f   : > { %1908 = vst [vmem:[%s3034_s19 + $0x18] sm:$0xff] %v1745_v51 }
 0x2a0   : > { %1885 = vmatpush.bf16.msrb.mxu2 %v1659_v19  ;;  %1898 = vmatpush.bf16.msrb.mxu3 %v1660_v38 }
 0x2a1   : > { %2158 = vmatmul.msk.bf16.vlgmr.msrb.gmra.mxu0 %vm1024_vm2, %v2934_v23  ;;  %2159 = vmatmul.msk.bf16.vlgmr.msrb.gmra.mxu1 %vm1024_vm2, %v2934_v23 }
 0x2a4   : > { %1886 = vmatpush.bf16.msrb.mxu2 %v1643_v7  ;;  %1899 = vmatpush.bf16.msrb.mxu3 %v1644_v17  ;;  %v1771_v45 = vpop.f32.mrf.mxu1 }
 0x2a5   : > { %v1734_v29 = vpop.f32.mrf.mxu2  ;;  %v1747_v54 = vpop.f32.mrf.mxu3  ;;  %1910 = vst [vmem:[%s3034_s19 + $0x28] sm:$0xff] %v1771_v45 }
 0x2a7   : > { %2160 = vmatmul.msk.bf16.vlgmr.msrb.gmra.mxu2 %vm1024_vm2, %v2934_v23  ;;  %2161 = vmatmul.msk.bf16.vlgmr.msrb.gmra.mxu3 %vm1024_vm2, %v2934_v23  ;;  %v1708_v23 = vpop.f32.mrf.mxu0 }
 0x2ac   : > { %v1773_v60 = vpop.f32.mrf.mxu1 }
 0x2ad   : > { %v1784_v4 = vpop.f32.mrf.mxu2  ;;  %v1797_v58 = vpop.f32.mrf.mxu3 }
 0x2ae   : > { %1911 = vst [vmem:[%s3034_s19 + $0x30] sm:$0xff] %v1784_v4 }
 0x2af   : > { %v1758_v55 = vpop.f32.mrf.mxu0  ;;  %1912 = vst [vmem:[%s3034_s19 + $0x38] sm:$0xff] %v1797_v58 }
 0x2b0   : > { %1909 = vst [vmem:[%s3034_s19 + $0x20] sm:$0xff] %v1758_v55 }
 0x2b5   : > { %v1786_v11 = vpop.f32.mrf.mxu2  ;;  %v1799_v21 = vpop.f32.mrf.mxu3 }
 0x2b7   : > { %v1760_v9 = vpop.f32.mrf.mxu0 }
 0x2de   : > { %v1810_v39 = vpop.f32.mrf.mxu0  ;;  %v1823_v34 = vpop.f32.mrf.mxu1 }
 0x2df   : > { %1913 = vst [vmem:[%s3034_s19 + $0x40] sm:$0xff] %v1810_v39 }
 0x2e0   : > { %1914 = vst [vmem:[%s3034_s19 + $0x48] sm:$0xff] %v1823_v34 }
 0x2e6   : > { %v1812_v12 = vpop.f32.mrf.mxu0  ;;  %v1825_v16 = vpop.f32.mrf.mxu1 }
 0x2ea   : > { %v1836_v61 = vpop.f32.mrf.mxu2  ;;  %v1849_v1 = vpop.f32.mrf.mxu3 }
 0x2eb   : > { %1915 = vst [vmem:[%s3034_s19 + $0x50] sm:$0xff] %v1836_v61 }
 0x2ec   : > { %1916 = vst [vmem:[%s3034_s19 + $0x58] sm:$0xff] %v1849_v1 }
 0x2f2   : > { %v1838_v44 = vpop.f32.mrf.mxu2  ;;  %v1851_v63 = vpop.f32.mrf.mxu3 }
 0x31e   : > { %v1862_v32 = vpop.f32.mrf.mxu0  ;;  %v1875_v6 = vpop.f32.mrf.mxu1 }
 0x31f   : > { %1917 = vst [vmem:[%s3034_s19 + $0x60] sm:$0xff] %v1862_v32 }
 0x320   : > { %1918 = vst [vmem:[%s3034_s19 + $0x68] sm:$0xff] %v1875_v6 }
 0x326   : > { %v1864_v28 = vpop.f32.mrf.mxu0  ;;  %v1877_v33 = vpop.f32.mrf.mxu1 }
 0x32a   : > { %v1888_v56 = vpop.f32.mrf.mxu2  ;;  %v1901_v57 = vpop.f32.mrf.mxu3 }
 0x32b   : > { %1919 = vst [vmem:[%s3034_s19 + $0x70] sm:$0xff] %v1888_v56 }
 0x32c   : > { %1920 = vst [vmem:[%s3034_s19 + $0x78] sm:$0xff] %v1901_v57 }
 0x332   : > { %v1890_v47 = vpop.f32.mrf.mxu2  ;;  %v1903_v24 = vpop.f32.mrf.mxu3 }
 0x333 PF: > { %s14_s15 = sadd.s32 1, %s2186_s15  }
 0x334   : > { %p11_p4 = scmp.ge.s32.totalorder %s14_s15, 5  }
 0x336   :  { %13 = sbr.rel (!%p11_p4) target bundleno = 1 (0x1), region = 66 }

</bundles_post_ra>
